<compile_context>
chip_gen: v5e
topology: v5e:2x2
jax: 0.10.0
libtpu: 0.0.40
codegen_flags: <defaults>
</compile_context>

<pallas_src>
import functools

import jax
import jax.numpy as jnp
from jax.experimental import pallas as pl
from jax.experimental.pallas import tpu as pltpu

VAR_NFEATS = 19
EMB_SIZE = 64
LN_EPS = 1e-5


def _mlp2_kernel(x_ref, w1_ref, b1_ref, cs_ref, w2_ref, o_ref):
    # x_ref:  (tile, 19)  raw rows of variable_features (f32 or bf16)
    # w1_ref: (19, 64) bf16  first Linear weight with LayerNorm gain folded in
    # b1_ref: (1, 64)  f32   folded bias  (ln_b @ W1 + b1)
    # cs_ref: (1, 64)  f32   column sums of the folded weight (mean correction)
    # w2_ref: (64, 1)  bf16  second Linear weight (no bias)
    # o_ref:  (tile, 1) f32
    x32 = x_ref[...].astype(jnp.float32)

    # One-pass LayerNorm statistics: var = E[x^2] - mean^2 (clamped >= 0 to
    # guard f32 cancellation), biased variance, eps = 1e-5.
    inv_f = jnp.float32(1.0 / VAR_NFEATS)
    s1 = jnp.sum(x32, axis=-1, keepdims=True)
    s2 = jnp.sum(x32 * x32, axis=-1, keepdims=True)
    mean = s1 * inv_f
    var = jnp.maximum(s2 * inv_f - mean * mean, 0.0)
    inv_std = jax.lax.rsqrt(var + LN_EPS)

    # First Linear on raw x (bf16 operands, f32 accumulation); LayerNorm is
    # applied afterwards via the decomposition — xhat is never materialized.
    xw = jnp.dot(x_ref[...].astype(jnp.bfloat16), w1_ref[...],
                 preferred_element_type=jnp.float32)
    h = jnp.maximum(inv_std * (xw - mean * cs_ref[...]) + b1_ref[...], 0.0)

    # Second Linear (64 -> 1) in the MXU's natural (M,K)@(K,N) orientation —
    # no transposed dot_general, so no hidden XLU transpose of h.
    out = jnp.dot(h.astype(jnp.bfloat16), w2_ref[...],
                  preferred_element_type=jnp.float32)
    o_ref[...] = out.astype(o_ref.dtype)


def _round_up(x, m):
    return (x + m - 1) // m * m


@functools.partial(jax.jit, static_argnames=("tile_n",))
def mlp2_policy_forward(variable_features, params, *, tile_n=4096):
    """variable_features: [N, 19] -> [N] (PyTorch forward incl. squeeze(-1))."""
    n, f = variable_features.shape
    assert f == VAR_NFEATS
    if n == 0:  # empty input guard (shapes are static under jit)
        return jnp.zeros((0,), jnp.float32)

    # Fold the LayerNorm affine into the first Linear (mathematically exact)
    # and precompute the column sums needed for the mean correction.
    ln_w = params["ln_w"].astype(jnp.float32)
    ln_b = params["ln_b"].astype(jnp.float32)
    w1 = params["w1"].astype(jnp.float32)            # (19, 64)
    b1 = params["b1"].astype(jnp.float32)            # (64,)
    w2 = params["w2"].astype(jnp.float32)            # (64, 1)
    w1f = ln_w[:, None] * w1                         # (19, 64)
    b1f = (ln_b @ w1 + b1).reshape(1, EMB_SIZE)      # (1, 64) f32
    cs = jnp.sum(w1f, axis=0, keepdims=True)         # (1, 64) f32
    w1f_bf = w1f.astype(jnp.bfloat16)                # MXU operands in bf16
    w2_bf = w2.reshape(EMB_SIZE, 1).astype(jnp.bfloat16)

    # Tile selection: at least 2 grid steps (v7x megacore split), 128-row
    # aligned tiles, minimal padding.
    num_tiles = max(2, pl.cdiv(n, int(tile_n)))
    tile = _round_up(pl.cdiv(n, num_tiles), 128)
    n_pad = num_tiles * tile

    x = variable_features                            # no wrapper-side up-cast
    if n_pad != n:
        x = jnp.pad(x, ((0, n_pad - n), (0, 0)))     # zero rows are safe

    out = pl.pallas_call(
        _mlp2_kernel,
        out_shape=jax.ShapeDtypeStruct((n_pad, 1), jnp.float32),
        grid=(num_tiles,),
        in_specs=[
            pl.BlockSpec((tile, VAR_NFEATS), lambda i: (i, 0)),
            pl.BlockSpec((VAR_NFEATS, EMB_SIZE), lambda i: (0, 0)),
            pl.BlockSpec((1, EMB_SIZE), lambda i: (0, 0)),
            pl.BlockSpec((1, EMB_SIZE), lambda i: (0, 0)),
            pl.BlockSpec((EMB_SIZE, 1), lambda i: (0, 0)),
        ],
        out_specs=pl.BlockSpec((tile, 1), lambda i: (i, 0)),
        compiler_params=pltpu.CompilerParams(
            dimension_semantics=("parallel",),
            vmem_limit_bytes=48 * 1024 * 1024),
    )(x, w1f_bf, b1f, cs, w2_bf)

    return out[:n, 0]


def mlp2_policy_apply(params, constraint_features, edge_indices, edge_features,
                      variable_features, *, tile_n=4096):
    """Mirrors MLP2Policy.forward — graph inputs are unused by the module."""
    del constraint_features, edge_indices, edge_features
    return mlp2_policy_forward(variable_features, params, tile_n=tile_n)


def init_params(key):
    """Synthetic parameter init matching the module's shapes.

    LayerNorm: weight=1, bias=0 (PyTorch defaults).
    Linear layers: uniform(-1/sqrt(fan_in), 1/sqrt(fan_in)) like PyTorch default.
    """
    k1, k2, k3 = jax.random.split(key, 3)
    bound1 = 1.0 / jnp.sqrt(jnp.float32(VAR_NFEATS))
    bound2 = 1.0 / jnp.sqrt(jnp.float32(EMB_SIZE))
    return {
        "ln_w": jnp.ones((VAR_NFEATS,), jnp.float32),
        "ln_b": jnp.zeros((VAR_NFEATS,), jnp.float32),
        "w1": jax.random.uniform(k1, (VAR_NFEATS, EMB_SIZE), jnp.float32,
                                 -bound1, bound1),
        "b1": jax.random.uniform(k2, (EMB_SIZE,), jnp.float32, -bound1, bound1),
        "w2": jax.random.uniform(k3, (EMB_SIZE, 1), jnp.float32, -bound2, bound2),
    }


def _reference_forward(variable_features, params):
    """Exact f32 reference of the PyTorch module."""
    x = variable_features.astype(jnp.float32)
    mean = jnp.mean(x, axis=-1, keepdims=True)
    var = jnp.mean((x - mean) ** 2, axis=-1, keepdims=True)
    xn = (x - mean) / jnp.sqrt(var + LN_EPS)
    xn = xn * params["ln_w"] + params["ln_b"]
    h = jnp.maximum(xn @ params["w1"] + params["b1"], 0.0)
    return (h @ params["w2"])[:, 0]


if __name__ == "__main__":
    key = jax.random.PRNGKey(0)
    kp, kc, ke, kef, kv = jax.random.split(key, 5)

    params = init_params(kp)

    # Small, module-consistent shapes. Only variable_features affects the
    # output; the graph inputs are passed through unused (as in PyTorch).
    n_vars = 300          # not a multiple of 128: exercises padding + >=2 tiles
    n_cons = 8
    n_edges = 16
    constraint_features = jax.random.normal(kc, (n_cons, 5), jnp.float32)
    edge_indices = jax.random.randint(ke, (2, n_edges), 0, n_cons)
    edge_features = jax.random.normal(kef, (n_edges, 1), jnp.float32)
    variable_features = jax.random.normal(kv, (n_vars, VAR_NFEATS), jnp.float32)

    out = mlp2_policy_apply(params, constraint_features, edge_indices,
                            edge_features, variable_features)
    out = jax.block_until_ready(out)

    ref = _reference_forward(variable_features, params)
    assert out.shape == (n_vars,)
    # Tolerance relaxed vs. f32 reference because the MXU operands are bf16
    # (f32 accumulation): typical error is ~1e-3..1e-2 absolute at O(1) outputs.
    assert jnp.allclose(out, ref, atol=5e-2, rtol=5e-2), (
        f"max err {jnp.max(jnp.abs(out - ref))}")

    print("KERNEL_OK")
</pallas_src>

<mosaic_0001>
module attributes {stable_mosaic.version = 11 : i64} {
  func.func @_mlp2_kernel(%arg0: i32, %arg1: memref<256x19xf32, #tpu.memory_space<vmem>>, %arg2: memref<19x64xbf16, #tpu.memory_space<vmem>>, %arg3: memref<1x64xf32, #tpu.memory_space<vmem>>, %arg4: memref<1x64xf32, #tpu.memory_space<vmem>>, %arg5: memref<64x1xbf16, #tpu.memory_space<vmem>>, %arg6: memref<256x1xf32, #tpu.memory_space<vmem>>) attributes {dimension_semantics = [#tpu.dimension_semantics<parallel>], iteration_bounds = array<i64: 2>, scalar_prefetch = 0 : i64, scratch_operands = 0 : i64, tpu.core_type = #tpu.core_type<tc>, window_params = [{transform_indices = @transform_0, window_bounds = array<i64: 256, 19>}, {pipeline_mode = #tpu.pipeline_mode<synchronous>, transform_indices = @transform_1, window_bounds = array<i64: 19, 64>}, {pipeline_mode = #tpu.pipeline_mode<synchronous>, transform_indices = @transform_2, window_bounds = array<i64: 1, 64>}, {pipeline_mode = #tpu.pipeline_mode<synchronous>, transform_indices = @transform_3, window_bounds = array<i64: 1, 64>}, {pipeline_mode = #tpu.pipeline_mode<synchronous>, transform_indices = @transform_4, window_bounds = array<i64: 64, 1>}, {transform_indices = @transform_5, window_bounds = array<i64: 256, 1>}]} {
    %c0 = arith.constant 0 : index
    %c0_0 = arith.constant 0 : index
    %0 = vector.load %arg1[%c0, %c0_0] : memref<256x19xf32, #tpu.memory_space<vmem>>, vector<256x19xf32>
    %cst = arith.constant dense<0.000000e+00> : vector<256xf32>
    %1 = vector.multi_reduction <add>, %0, %cst [1] : vector<256x19xf32> to vector<256xf32>
    %2 = vector.shape_cast %1 : vector<256xf32> to vector<256x1xf32>
    %3 = arith.mulf %0, %0 : vector<256x19xf32>
    %cst_1 = arith.constant dense<0.000000e+00> : vector<256xf32>
    %4 = vector.multi_reduction <add>, %3, %cst_1 [1] : vector<256x19xf32> to vector<256xf32>
    %5 = vector.shape_cast %4 : vector<256xf32> to vector<256x1xf32>
    %cst_2 = arith.constant 0.0526315793 : f32
    %6 = vector.broadcast %cst_2 : f32 to vector<256x1xf32>
    %7 = arith.mulf %2, %6 : vector<256x1xf32>
    %cst_3 = arith.constant 0.0526315793 : f32
    %8 = vector.broadcast %cst_3 : f32 to vector<256x1xf32>
    %9 = arith.mulf %5, %8 : vector<256x1xf32>
    %10 = arith.mulf %7, %7 : vector<256x1xf32>
    %11 = arith.subf %9, %10 : vector<256x1xf32>
    %cst_4 = arith.constant 0.000000e+00 : f32
    %12 = vector.broadcast %cst_4 : f32 to vector<256x1xf32>
    %13 = arith.maximumf %11, %12 : vector<256x1xf32>
    %cst_5 = arith.constant 9.99999974E-6 : f32
    %14 = vector.broadcast %cst_5 : f32 to vector<256x1xf32>
    %15 = arith.addf %13, %14 : vector<256x1xf32>
    %16 = math.rsqrt %15 : vector<256x1xf32>
    %c0_6 = arith.constant 0 : index
    %c0_7 = arith.constant 0 : index
    %17 = vector.load %arg1[%c0_6, %c0_7] : memref<256x19xf32, #tpu.memory_space<vmem>>, vector<256x19xf32>
    %18 = arith.truncf %17 : vector<256x19xf32> to vector<256x19xbf16>
    %c0_8 = arith.constant 0 : index
    %c0_9 = arith.constant 0 : index
    %19 = vector.load %arg2[%c0_8, %c0_9] : memref<19x64xbf16, #tpu.memory_space<vmem>>, vector<19x64xbf16>
    %cst_10 = arith.constant dense<0.000000e+00> : vector<256x64xf32>
    %20 = tpu.matmul %18, %19, %cst_10 {dimension_numbers = #tpu.dot_dimension_numbers<[1], [0], [0], [1], [0, 0, 1, 1], [], []>} : vector<256x19xbf16>, vector<19x64xbf16>, vector<256x64xf32> -> vector<256x64xf32>
    %c0_11 = arith.constant 0 : index
    %c0_12 = arith.constant 0 : index
    %21 = vector.load %arg4[%c0_11, %c0_12] : memref<1x64xf32, #tpu.memory_space<vmem>>, vector<1x64xf32>
    %22 = vector.broadcast %7 : vector<256x1xf32> to vector<256x64xf32>
    %23 = vector.broadcast %21 : vector<1x64xf32> to vector<256x64xf32>
    %24 = arith.mulf %22, %23 : vector<256x64xf32>
    %25 = arith.subf %20, %24 : vector<256x64xf32>
    %26 = vector.broadcast %16 : vector<256x1xf32> to vector<256x64xf32>
    %27 = arith.mulf %26, %25 : vector<256x64xf32>
    %c0_13 = arith.constant 0 : index
    %c0_14 = arith.constant 0 : index
    %28 = vector.load %arg3[%c0_13, %c0_14] : memref<1x64xf32, #tpu.memory_space<vmem>>, vector<1x64xf32>
    %29 = vector.broadcast %28 : vector<1x64xf32> to vector<256x64xf32>
    %30 = arith.addf %27, %29 : vector<256x64xf32>
    %cst_15 = arith.constant 0.000000e+00 : f32
    %31 = vector.broadcast %cst_15 : f32 to vector<256x64xf32>
    %32 = arith.maximumf %30, %31 : vector<256x64xf32>
    %33 = arith.truncf %32 : vector<256x64xf32> to vector<256x64xbf16>
    %c0_16 = arith.constant 0 : index
    %c0_17 = arith.constant 0 : index
    %34 = vector.load %arg5[%c0_16, %c0_17] : memref<64x1xbf16, #tpu.memory_space<vmem>>, vector<64x1xbf16>
    %cst_18 = arith.constant dense<0.000000e+00> : vector<256x1xf32>
    %35 = tpu.matmul %33, %34, %cst_18 {dimension_numbers = #tpu.dot_dimension_numbers<[1], [0], [0], [1], [0, 0, 1, 1], [], []>} : vector<256x64xbf16>, vector<64x1xbf16>, vector<256x1xf32> -> vector<256x1xf32>
    %c0_19 = arith.constant 0 : index
    %c0_20 = arith.constant 0 : index
    %36 = vector.load %arg6[%c0_19, %c0_20] : memref<256x1xf32, #tpu.memory_space<vmem>>, vector<256x1xf32>
    tpu.vector_store %arg6[%c0_19, %c0_20], %35 {strides = array<i32>} : memref<256x1xf32, #tpu.memory_space<vmem>>, vector<256x1xf32>,
    return
  }
  func.func @transform_0(%arg0: i32) -> (i32, i32) {
    %c0_i32 = arith.constant 0 : i32
    %c0_i32_0 = arith.constant 0 : i32
    return %arg0, %c0_i32 : i32, i32
  }
  func.func @transform_1(%arg0: i32) -> (i32, i32) {
    %c0_i32 = arith.constant 0 : i32
    %c0_i32_0 = arith.constant 0 : i32
    %c0_i32_1 = arith.constant 0 : i32
    return %c0_i32, %c0_i32_0 : i32, i32
  }
  func.func @transform_2(%arg0: i32) -> (i32, i32) {
    %c0_i32 = arith.constant 0 : i32
    %c0_i32_0 = arith.constant 0 : i32
    %c0_i32_1 = arith.constant 0 : i32
    return %c0_i32, %c0_i32_0 : i32, i32
  }
  func.func @transform_3(%arg0: i32) -> (i32, i32) {
    %c0_i32 = arith.constant 0 : i32
    %c0_i32_0 = arith.constant 0 : i32
    %c0_i32_1 = arith.constant 0 : i32
    return %c0_i32, %c0_i32_0 : i32, i32
  }
  func.func @transform_4(%arg0: i32) -> (i32, i32) {
    %c0_i32 = arith.constant 0 : i32
    %c0_i32_0 = arith.constant 0 : i32
    %c0_i32_1 = arith.constant 0 : i32
    return %c0_i32, %c0_i32_0 : i32, i32
  }
  func.func @transform_5(%arg0: i32) -> (i32, i32) {
    %c0_i32 = arith.constant 0 : i32
    %c0_i32_0 = arith.constant 0 : i32
    return %arg0, %c0_i32 : i32, i32
  }
}

</mosaic_0001>

<bundles_post_ra>
// kernel: mlp2_policy_forward.1
= control target key start
LH: loop header
LB: loop body
LE: loop exit
PB: predicated region body
PF: predicated region fallthrough
CT: control target
= control target key end

     0   :  { %s1803_s18 = smov 0   ;;  %s3175_s0 = inlined_call_operand.vmem [shape: f32[512,19], index: 0, kind: input, shape index: {}]   ;;  %s3176_s1 = inlined_call_operand.vmem [shape: bf16[19,64], index: 1, kind: input, shape index: {}]   ;;  %s3177_s2 = inlined_call_operand.vmem [shape: f32[1,64], index: 2, kind: input, shape index: {}]   ;;  %s3178_s3 = inlined_call_operand.vmem [shape: f32[1,64], index: 3, kind: input, shape index: {}]   ;;  %s3179_s4 = inlined_call_operand.vmem [shape: bf16[64,1], index: 4, kind: input, shape index: {}]   ;;  %s3180_s5 = inlined_call_operand.vmem [shape: f32[512,1], index: 5, kind: output, shape index: {}]  }
   0x1 LB: > { %s1613_s19 = sadd.s32 4294967295, %s1770_s18   ;;  %p1617_p0 = scmp.ge.s32.totalorder %s1770_s18, 1  ;;  %s1770_s18 = sphi %s1803_s18, %s15_s18  }
   0x2   : > { %p188_p1 = scmp.lt.s32.totalorder %s1770_s18, 3 }
   0x4   : > { %p189_p2 = pnand %p1617_p0, %p188_p1 }
   0x6   : > { %192 = sbr.rel (%p189_p2) target bundleno = 550 (0x226), region = 40 }
   0xb   : > { %v1016_v0 = vld [vmem:[%s3176_s1 + $0x8] sm:$0x3]  ;;  %vm1074_vm0 = vcmask 1040384   ;;  %vm1075_vm1 = vcmask 1041408   ;;  %s1618_s22 = sshll.u32 %s1613_s19, 5  ;;  %v1772_v2 = vmov 65535  }
   0xc   : > { %v1022_v1 = vunpack.c.l.b16 %v1016_v0  ;;  %v1076_v3 = vsel %vm1074_vm0, 4294967295, %v1772_v2  ;;  %p217_p3 = scmp.lt.s32.totalorder %s1618_s22, 63  ;;  %vm261_vm2 = vcmask 154624   ;;  %v1676_v7 = vld [vmem:[%s3176_s1] sm:$0xff]  ;;  %vm1386_vm9 = vcmask 523264  }
   0xd   : > { %v1077_v4 = vsel %vm1075_vm1, %v1076_v3, 0 }
   0xe   : > { %v1024_v5 = vpack.c.b16 %v1022_v1, %v1022_v1  ;;  %s3246_s22 = smov (!%p217_p3, %s1618_s22), 63 }
   0xf   : > { %s1619_s23 = sshll.u32 %s3246_s22, 3 }
  0x10   : > { %v1079_v6 = vand.u32 %v1077_v4, %v1024_v5  ;;  %s1822_s26 = scalar_lea.vmem %s3175_s0, %s1619_s23  ;;  %s3010_s25 = scalar_lea.vmem %s3180_s5, %s1619_s23 }
  0x11   : > { %v1828_v8 = vld [vmem:[%s1822_s26 + $0x80] sm:$0xff]  ;;  %v230_v10 = vld [vmem:[%s1822_s26 + $0x8] sm:$0xff]  ;;  %v247_v22 = vld [vmem:[%s1822_s26 + $0x90] sm:$0xff] }
  0x12   : > { %1087 = vmatpush.bf16.msra.mxu0 %v1079_v6  ;;  %v229_v9 = vld [vmem:[%s1822_s26] sm:$0xff]  ;;  %1681 = vmatpush.bf16.msra.mxu3 %v1079_v6  ;;  %v310_v11 = vsel %vm261_vm2, %v1828_v8, 0.0  ;;  %v374_v13 = vmul.f32 %v1828_v8, %v1828_v8  ;;  %v1838_v14 = vld [vmem:[%s1822_s26 + $0x88] sm:$0xff]  ;;  %v265_v19 = vsel %vm261_vm2, %v230_v10, 0.0  ;;  %v359_v23 = vmul.f32 %v230_v10, %v230_v10  ;;  %v231_v26 = vld [vmem:[%s1822_s26 + $0x10] sm:$0xff] }
  0x13   : > { %v262_v12 = vsel %vm261_vm2, %v229_v9, 0.0  ;;  %311 = vadd.xlane.f32.xlu0 %v310_v11  ;;  %v998_v16 = vpack.c.bf16 %v230_v10, %v229_v9  ;;  %v375_v17 = vmul.f32 %v1838_v14, %v1838_v14  ;;  %v313_v18 = vsel %vm261_vm2, %v1838_v14, 0.0  ;;  %v232_v27 = vld [vmem:[%s1822_s26 + $0x18] sm:$0xff]  ;;  %v233_v39 = vld [vmem:[%s1822_s26 + $0x20] sm:$0xff]  ;;  %v234_v40 = vld [vmem:[%s1822_s26 + $0x28] sm:$0xff] }
  0x14   : > { %263 = vadd.xlane.f32.xlu2 %v262_v12  ;;  %v438_v15 = vsel %vm261_vm2, %v374_v13, 0.0  ;;  %v358_v21 = vmul.f32 %v229_v9, %v229_v9  ;;  %v316_v25 = vsel %vm261_vm2, %v247_v22, 0.0  ;;  %v248_v28 = vld [vmem:[%s1822_s26 + $0x98] sm:$0xff]  ;;  %v393_v29 = vsel %vm261_vm2, %v359_v23, 0.0  ;;  %v250_v44 = vld [vmem:[%s1822_s26 + $0xa8] sm:$0xff]  ;;  %v249_v45 = vld [vmem:[%s1822_s26 + $0xa0] sm:$0xff] }
  0x15   : > { %439 = vadd.xlane.f32.xlu1 %v438_v15  ;;  %v441_v20 = vsel %vm261_vm2, %v375_v17, 0.0  ;;  %v999_v30 = vpack.c.bf16 %v232_v27, %v231_v26  ;;  %v377_v31 = vmul.f32 %v248_v28, %v248_v28  ;;  %v376_v32 = vmul.f32 %v247_v22, %v247_v22  ;;  %v235_v53 = vld [vmem:[%s1822_s26 + $0x30] sm:$0xff]  ;;  %v236_v54 = vld [vmem:[%s1822_s26 + $0x38] sm:$0xff]  ;;  %v237_v4 = vld [vmem:[%s1822_s26 + $0x40] sm:$0xff] }
  0x16   : > { %1088 = vmatpush.bf16.msra.mxu0 %v1676_v7  ;;  %1682 = vmatpush.bf16.msra.mxu3 %v1676_v7  ;;  %v390_v24 = vsel %vm261_vm2, %v358_v21, 0.0  ;;  %v319_v33 = vsel %vm261_vm2, %v248_v28, 0.0  ;;  %v360_v36 = vmul.f32 %v231_v26, %v231_v26  ;;  %v268_v37 = vsel %vm261_vm2, %v231_v26, 0.0  ;;  %v251_v62 = vld [vmem:[%s1822_s26 + $0xb0] sm:$0xff]  ;;  %v252_v1 = vld [vmem:[%s1822_s26 + $0xb8] sm:$0xff]  ;;  %v238_v5 = vld [vmem:[%s1822_s26 + $0x48] sm:$0xff] }
  0x17   : > { %v447_v34 = vsel %vm261_vm2, %v377_v31, 0.0  ;;  %v444_v35 = vsel %vm261_vm2, %v376_v32, 0.0  ;;  %v271_v41 = vsel %vm261_vm2, %v232_v27, 0.0  ;;  %v1000_v42 = vpack.c.bf16 %v234_v40, %v233_v39  ;;  %v240_v21 = vld [vmem:[%s1822_s26 + $0x58] sm:$0xff] }
  0x18   : > { %v396_v38 = vsel %vm261_vm2, %v360_v36, 0.0  ;;  %v361_v43 = vmul.f32 %v232_v27, %v232_v27  ;;  %v325_v47 = vsel %vm261_vm2, %v250_v44, 0.0  ;;  %v322_v48 = vsel %vm261_vm2, %v249_v45, 0.0 }
  0x19   : > { %1626 = vmatmul.msk.bf16.vlgmr.msra.gmra.mxu0 %vm261_vm2, %v998_v16  ;;  %v378_v49 = vmul.f32 %v249_v45, %v249_v45  ;;  %v379_v50 = vmul.f32 %v250_v44, %v250_v44  ;;  %v274_v52 = vsel %vm261_vm2, %v233_v39, 0.0  ;;  %v1007_v56 = vpack.c.bf16 %v248_v28, %v247_v22  ;;  %v253_v16 = vld [vmem:[%s1822_s26 + $0xc0] sm:$0xff]  ;;  %v254_v22 = vld [vmem:[%s1822_s26 + $0xc8] sm:$0xff] }
  0x1a   : > { %v399_v46 = vsel %vm261_vm2, %v361_v43, 0.0  ;;  %v1001_v57 = vpack.c.bf16 %v236_v54, %v235_v53  ;;  %v363_v58 = vmul.f32 %v234_v40, %v234_v40  ;;  %v362_v59 = vmul.f32 %v233_v39, %v233_v39  ;;  %v1916_v39 = vld [vmem:[%s1822_s26 + $0xd8] sm:$0xff] }
  0x1b   : > { %314 = vadd.xlane.f32.xlu0 %v313_v18  ;;  %v450_v51 = vsel %vm261_vm2, %v378_v49, 0.0  ;;  %v453_v55 = vsel %vm261_vm2, %v379_v50, 0.0  ;;  %1635 = vmatmul.msk.bf16.vlgmr.msra.gmra.mxu3 %vm261_vm2, %v1007_v56  ;;  %v277_v60 = vsel %vm261_vm2, %v234_v40, 0.0  ;;  %v380_v0 = vmul.f32 %v251_v62, %v251_v62  ;;  %v1919_v40 = vld [vmem:[%s1822_s26 + $0xd0] sm:$0xff]  ;;  %v1937_v49 = vld [vmem:[%s1822_s26 + $0x78] sm:$0xff] }
  0x1c   : > { %266 = vadd.xlane.f32.xlu2 %v265_v19  ;;  %v405_v61 = vsel %vm261_vm2, %v363_v58, 0.0  ;;  %v402_v63 = vsel %vm261_vm2, %v362_v59, 0.0  ;;  %v328_v2 = vsel %vm261_vm2, %v251_v62, 0.0  ;;  %v331_v6 = vsel %vm261_vm2, %v252_v1, 0.0 }
  0x1d   : > { %442 = vadd.xlane.f32.xlu1 %v441_v20  ;;  %v456_v3 = vsel %vm261_vm2, %v380_v0, 0.0  ;;  %v1002_v7 = vpack.c.bf16 %v238_v5, %v237_v4  ;;  %v381_v9 = vmul.f32 %v252_v1, %v252_v1  ;;  %v283_v11 = vsel %vm261_vm2, %v236_v54, 0.0  ;;  %v239_v20 = vld [vmem:[%s1822_s26 + $0x50] sm:$0xff] }
  0x1e   : > { %v1008_v12 = vpack.c.bf16 %v250_v44, %v249_v45  ;;  %v280_v13 = vsel %vm261_vm2, %v235_v53, 0.0  ;;  %v364_v15 = vmul.f32 %v235_v53, %v235_v53  ;;  %v365_v17 = vmul.f32 %v236_v54, %v236_v54 }
  0x1f   : > { %v459_v10 = vsel %vm261_vm2, %v381_v9, 0.0  ;;  %v334_v19 = vsel %vm261_vm2, %v253_v16, 0.0  ;;  %v382_v26 = vmul.f32 %v253_v16, %v253_v16  ;;  %v337_v27 = vsel %vm261_vm2, %v254_v22, 0.0  ;;  %v1971_v9 = vld [vmem:[%s1822_s26 + $0xe8] sm:$0xff] }
  0x20   : > { %v408_v18 = vsel %vm261_vm2, %v364_v15, 0.0  ;;  %v411_v23 = vsel %vm261_vm2, %v365_v17, 0.0  ;;  %v366_v31 = vmul.f32 %v237_v4, %v237_v4  ;;  %v286_v32 = vsel %vm261_vm2, %v237_v4, 0.0  ;;  %v1678_v17 = vld [vmem:[%s3179_s4 + $0x8] sm:$0xff] }
  0x21   : > { %v289_v36 = vsel %vm261_vm2, %v238_v5, 0.0  ;;  %v340_v43 = vsel %vm261_vm2, %v1919_v40, 0.0  ;;  %v384_v44 = vmul.f32 %v1919_v40, %v1919_v40  ;;  %v385_v45 = vmul.f32 %v1916_v39, %v1916_v39 }
  0x22   : > { %v369_v53 = vmul.f32 %v240_v21, %v240_v21  ;;  %v368_v56 = vmul.f32 %v239_v20, %v239_v20  ;;  %v295_v59 = vsel %vm261_vm2, %v240_v21, 0.0 }
  0x23   : > { %391 = vadd.xlane.f32.xlu0 %v390_v24  ;;  %v1003_v24 = vpack.c.bf16 %v240_v21, %v239_v20  ;;  %v471_v50 = vsel %vm261_vm2, %v385_v45, 0.0  ;;  %v1006_v21 = vpack.c.bf16 %v1838_v14, %v1828_v8 }
  0x24   : > { %317 = vadd.xlane.f32.xlu2 %v316_v25  ;;  %v383_v25 = vmul.f32 %v254_v22, %v254_v22  ;;  %v420_v0 = vsel %vm261_vm2, %v368_v56, 0.0 }
  0x25   : > { %394 = vadd.xlane.f32.xlu1 %v393_v29  ;;  %v462_v29 = vsel %vm261_vm2, %v382_v26, 0.0 }
  0x26   : > { %v465_v28 = vsel %vm261_vm2, %v383_v25, 0.0 }
  0x29   : > { %1627 = vmatmul.msk.bf16.gmra.mxu0 %vm261_vm2, %v999_v30  ;;  %v1009_v30 = vpack.c.bf16 %v252_v1, %v251_v62  ;;  %v1680_v1 = vld [vmem:[%s3179_s4 + $0x18] sm:$0xff] }
  0x2a   : > { %1439 = vmatpush.bf16.msra.mxu1 %v1680_v1  ;;  %1683 = vmatpush.bf16.msra.mxu2 %v1680_v1 }
  0x2b   : > { %320 = vadd.xlane.f32.xlu0 %v319_v33  ;;  %1636 = vmatmul.msk.bf16.gmra.mxu3 %vm261_vm2, %v1008_v12  ;;  %v414_v33 = vsel %vm261_vm2, %v366_v31, 0.0 }
  0x2c   : > { %448 = vadd.xlane.f32.xlu2 %v447_v34  ;;  %v1907_v34 = vld [vmem:[%s1822_s26 + $0x60] sm:$0xff] }
  0x2d   : > { %445 = vadd.xlane.f32.xlu1 %v444_v35  ;;  %v1910_v35 = vld [vmem:[%s1822_s26 + $0x68] sm:$0xff] }
  0x2e   : > { %v301_v14 = vsel %vm261_vm2, %v1910_v35, 0.0 }
  0x33   : > { %269 = vadd.xlane.f32.xlu0 %v268_v37  ;;  %v1004_v37 = vpack.c.bf16 %v1910_v35, %v1907_v34 }
  0x34   : > { %397 = vadd.xlane.f32.xlu2 %v396_v38  ;;  %v367_v38 = vmul.f32 %v238_v5, %v238_v5 }
  0x35   : > { %272 = vadd.xlane.f32.xlu1 %v271_v41 }
  0x36   : > { %v417_v41 = vsel %vm261_vm2, %v367_v38, 0.0 }
  0x39   : > { %1628 = vmatmul.msk.bf16.gmra.mxu0 %vm261_vm2, %v1000_v42  ;;  %v343_v42 = vsel %vm261_vm2, %v1916_v39, 0.0 }
  0x3b   : > { %400 = vadd.xlane.f32.xlu0 %v399_v46  ;;  %1637 = vmatmul.msk.bf16.gmra.mxu3 %vm261_vm2, %v1009_v30  ;;  %v468_v46 = vsel %vm261_vm2, %v384_v44, 0.0  ;;  %v1677_v30 = vld [vmem:[%s3179_s4] sm:$0xff] }
  0x3c   : > { %326 = vadd.xlane.f32.xlu2 %v325_v47  ;;  %v292_v47 = vsel %vm261_vm2, %v239_v20, 0.0 }
  0x3d   : > { %323 = vadd.xlane.f32.xlu1 %v322_v48  ;;  %v1934_v48 = vld [vmem:[%s1822_s26 + $0x70] sm:$0xff] }
  0x43   : > { %451 = vadd.xlane.f32.xlu0 %v450_v51  ;;  %v1010_v51 = vpack.c.bf16 %v254_v22, %v253_v16  ;;  %v349_v16 = vsel %vm261_vm2, %v1971_v9, 0.0  ;;  %v387_v22 = vmul.f32 %v1971_v9, %v1971_v9 }
  0x44   : > { %275 = vadd.xlane.f32.xlu2 %v274_v52  ;;  %v1005_v52 = vpack.c.bf16 %v1937_v49, %v1934_v48 }
  0x45   : > { %454 = vadd.xlane.f32.xlu1 %v453_v55  ;;  %v477_v8 = vsel %vm261_vm2, %v387_v22, 0.0 }
  0x49   : > { %1629 = vmatmul.msk.bf16.gmra.mxu0 %vm261_vm2, %v1001_v57 }
  0x4b   : > { %278 = vadd.xlane.f32.xlu0 %v277_v60  ;;  %1638 = vmatmul.msk.bf16.gmra.mxu3 %vm261_vm2, %v1010_v51  ;;  %v423_v60 = vsel %vm261_vm2, %v369_v53, 0.0 }
  0x4c   : > { %406 = vadd.xlane.f32.xlu2 %v405_v61 }
  0x4d   : > { %403 = vadd.xlane.f32.xlu1 %v402_v63  ;;  %v1955_v63 = vld [vmem:[%s1822_s26 + $0xe0] sm:$0xff] }
  0x53   : > { %329 = vadd.xlane.f32.xlu0 %v328_v2 }
  0x54   : > { %457 = vadd.xlane.f32.xlu2 %v456_v3  ;;  %v386_v3 = vmul.f32 %v1955_v63, %v1955_v63 }
  0x55   : > { %332 = vadd.xlane.f32.xlu1 %v331_v6  ;;  %v1679_v6 = vld [vmem:[%s3179_s4 + $0x10] sm:$0xff] }
  0x56   : > { %v474_v12 = vsel %vm261_vm2, %v386_v3, 0.0  ;;  %1440 = vmatpush.bf16.msra.mxu1 %v1679_v6  ;;  %1684 = vmatpush.bf16.msra.mxu2 %v1679_v6 }
  0x59   : > { %1630 = vmatmul.msk.bf16.gmra.mxu0 %vm261_vm2, %v1002_v7 }
  0x5a   : > { %1441 = vmatpush.bf16.msra.mxu1 %v1678_v17  ;;  %1685 = vmatpush.bf16.msra.mxu2 %v1678_v17 }
  0x5b   : > { %460 = vadd.xlane.f32.xlu0 %v459_v10 }
  0x5c   : > { %284 = vadd.xlane.f32.xlu2 %v283_v11  ;;  %v346_v11 = vsel %vm261_vm2, %v1955_v63, 0.0 }
  0x5d   : > { %281 = vadd.xlane.f32.xlu1 %v280_v13 }
  0x5e   : > { %1442 = vmatpush.bf16.msra.mxu1 %v1677_v30  ;;  %1686 = vmatpush.bf16.msra.mxu2 %v1677_v30 }
  0x63   : > { %409 = vadd.xlane.f32.xlu0 %v408_v18 }
  0x64   : > { %335 = vadd.xlane.f32.xlu2 %v334_v19 }
  0x65   : > { %412 = vadd.xlane.f32.xlu1 %v411_v23 }
  0x69   : > { %1631 = vmatmul.msk.bf16.gmra.mxu0 %vm261_vm2, %v1003_v24 }
  0x6b   : > { %338 = vadd.xlane.f32.xlu0 %v337_v27 }
  0x6c   : > { %466 = vadd.xlane.f32.xlu2 %v465_v28 }
  0x6d   : > { %463 = vadd.xlane.f32.xlu1 %v462_v29 }
  0x73   : > { %287 = vadd.xlane.f32.xlu0 %v286_v32 }
  0x74   : > { %415 = vadd.xlane.f32.xlu2 %v414_v33  ;;  %v298_v33 = vsel %vm261_vm2, %v1907_v34, 0.0 }
  0x75   : > { %290 = vadd.xlane.f32.xlu1 %v289_v36  ;;  %v1011_v36 = vpack.c.bf16 %v1916_v39, %v1919_v40 }
  0x77   : > { %1639 = vmatmul.msk.bf16.gmra.mxu3 %vm261_vm2, %v1011_v36 }
  0x79   : > { %1632 = vmatmul.msk.bf16.gmra.mxu0 %vm261_vm2, %v1004_v37 }
  0x7b   : > { %418 = vadd.xlane.f32.xlu0 %v417_v41 }
  0x7c   : > { %344 = vadd.xlane.f32.xlu2 %v343_v42  ;;  %v370_v42 = vmul.f32 %v1907_v34, %v1907_v34 }
  0x7d   : > { %341 = vadd.xlane.f32.xlu1 %v340_v43 }
  0x83   : > { %469 = vadd.xlane.f32.xlu0 %v468_v46  ;;  %v2022_v46 = vld [vmem:[%s1822_s26 + $0xf0] sm:$0xff] }
  0x84   : > { %293 = vadd.xlane.f32.xlu2 %v292_v47  ;;  %v371_v47 = vmul.f32 %v1910_v35, %v1910_v35 }
  0x85   : > { %472 = vadd.xlane.f32.xlu1 %v471_v50 }
  0x86   : > { %v312_v54 = vpop.xlane.xlu0 %311 }
  0x87   : > { %v264_v55 = vpop.xlane.xlu2 %263  ;;  %v1943_v57 = vmul.f32 0.05263158, %v312_v54  ;;  %v426_v54 = vsel %vm261_vm2, %v370_v42, 0.0 }
  0x88   : > { %v440_v58 = vpop.xlane.xlu1 %439  ;;  %v1987_v18 = vmul.f32 0.05263158, %v264_v55  ;;  %v352_v55 = vsel %vm261_vm2, %v2022_v46, 0.0 }
  0x89   : > { %1633 = vmatmul.msk.bf16.gmra.mxu0 %vm261_vm2, %v1005_v52  ;;  %v1950_v61 = vmul.f32 %v1943_v57, %v1943_v57  ;;  %v1952_v62 = vmul.f32 0.05263158, %v440_v58  ;;  %v429_v58 = vsel %vm261_vm2, %v371_v47, 0.0 }
  0x8a   : > { %v550_v23 = vmul.f32 %v1987_v18, %v1987_v18 }
  0x8b   : > { %v598_v2 = vsub.f32 %v1952_v62, %v1950_v61  ;;  %296 = vadd.xlane.f32.xlu0 %v295_v59  ;;  %v2045_v59 = vld [vmem:[%s1822_s26 + $0xf8] sm:$0xff] }
  0x8c   : > { %424 = vadd.xlane.f32.xlu2 %v423_v60 }
  0x8d   : > { %421 = vadd.xlane.f32.xlu1 %v420_v0 }
  0x8e   : > { %v315_v4 = vpop.xlane.xlu0 %314 }
  0x8f   : > { %v267_v5 = vpop.xlane.xlu2 %266  ;;  %v1968_v7 = vmul.f32 0.05263158, %v315_v4  ;;  %v388_v4 = vmul.f32 %v2022_v46, %v2022_v46 }
  0x90   : > { %v443_v10 = vpop.xlane.xlu1 %442  ;;  %v1989_v19 = vmul.f32 0.05263158, %v267_v5  ;;  %v389_v5 = vmul.f32 %v2045_v59, %v2045_v59 }
  0x91   : > { %v1978_v13 = vmul.f32 %v1968_v7, %v1968_v7  ;;  %v1980_v15 = vmul.f32 0.05263158, %v443_v10 }
  0x92   : > { %v551_v27 = vmul.f32 %v1989_v19, %v1989_v19 }
  0x93   : > { %v599_v20 = vsub.f32 %v1980_v15, %v1978_v13  ;;  %347 = vadd.xlane.f32.xlu0 %v346_v11 }
  0x94   : > { %475 = vadd.xlane.f32.xlu2 %v474_v12 }
  0x95   : > { %350 = vadd.xlane.f32.xlu1 %v349_v16  ;;  %v2063_v16 = vld [vmem:[%s3178_s3] ss:$0 sm:$0xff] }
  0x96   : > { %v1999_v24 = vpop.f32.mrf.mxu0  ;;  %v392_v25 = vpop.xlane.xlu0 %391  ;;  %v1174_v30 = vmul.f32 %v2063_v16, %v1987_v18  ;;  %v1175_v42 = vmul.f32 %v2063_v16, %v1989_v19 }
  0x97   : > { %v318_v26 = vpop.xlane.xlu2 %317  ;;  %v518_v28 = vmul.f32 0.05263158, %v392_v25 }
  0x98   : > { %v395_v29 = vpop.xlane.xlu1 %394  ;;  %v2014_v38 = vmul.f32 0.05263158, %v318_v26  ;;  %v355_v26 = vsel %vm261_vm2, %v2045_v59, 0.0 }
  0x99   : > { %1634 = vmatmul.msk.bf16.gmra.mxu0 %vm261_vm2, %v1006_v21  ;;  %v582_v31 = vsub.f32 %v518_v28, %v550_v23  ;;  %v519_v32 = vmul.f32 0.05263158, %v395_v29  ;;  %v480_v28 = vsel %vm261_vm2, %v388_v4, 0.0  ;;  %v483_v29 = vsel %vm261_vm2, %v389_v5, 0.0 }
  0x9a   : > { %v2028_v50 = vmul.f32 %v2014_v38, %v2014_v38  ;;  %v304_v5 = vsel %vm261_vm2, %v1934_v48, 0.0 }
  0x9b   : > { %v614_v37 = vmax.f32 %v582_v31, 0.0  ;;  %v583_v41 = vsub.f32 %v519_v32, %v551_v27  ;;  %478 = vadd.xlane.f32.xlu0 %v477_v8 }
  0x9c   : > { %302 = vadd.xlane.f32.xlu2 %v301_v14 }
  0x9d   : > { %v646_v43 = vadd.f32 1e-05, %v614_v37  ;;  %v615_v44 = vmax.f32 %v583_v41, 0.0  ;;  %299 = vadd.xlane.f32.xlu1 %v298_v33  ;;  %v372_v33 = vmul.f32 %v1934_v48, %v1934_v48  ;;  %v630_v48 = vmax.f32 %v598_v2, 0.0 }
  0x9e   : > { %v2019_v45 = vpop.f32.mrf.mxu0  ;;  %v321_v39 = vpop.xlane.xlu0 %320 }
  0x9f   : > { %v449_v40 = vpop.xlane.xlu2 %448  ;;  %1698 = vrsqrt.f32 %v646_v43  ;;  %v647_v34 = vadd.f32 1e-05, %v615_v44  ;;  %v2030_v51 = vmul.f32 0.05263158, %v321_v39  ;;  %vm684_vm3 = vweird.f32 %v646_v43 }
  0xa0   : > { %v2032_v52 = vmul.f32 0.05263158, %v449_v40  ;;  %v446_v53 = vpop.xlane.xlu1 %445  ;;  %v1012_v39 = vpack.c.bf16 %v1971_v9, %v1955_v63  ;;  %v432_v63 = vsel %vm261_vm2, %v372_v33, 0.0 }
  0xa1   : > { %1700 = vrsqrt.f32 %v647_v34  ;;  %v2039_v35 = vmul.f32 %v2030_v51, %v2030_v51  ;;  %v2041_v56 = vmul.f32 0.05263158, %v446_v53  ;;  %vm694_vm5 = vweird.f32 %v647_v34 }
  0xa2   : > { %1640 = vmatmul.msk.bf16.gmra.mxu3 %vm261_vm2, %v1012_v39 }
  0xa3   : > { %v601_v60 = vsub.f32 %v2032_v52, %v2039_v35  ;;  %v600_v0 = vsub.f32 %v2041_v56, %v2028_v50  ;;  %427 = vadd.xlane.f32.xlu0 %v426_v54 }
  0xa4   : > { %353 = vadd.xlane.f32.xlu2 %v352_v55 }
  0xa5   : > { %v2051_v1 = vpop.eup %1698  ;;  %430 = vadd.xlane.f32.xlu1 %v429_v58 }
  0xa6   : > { %v2053_v3 = vpop.f32.mrf.mxu0  ;;  %v679_v6 = vmul.f32 %v2051_v1, %v646_v43  ;;  %v270_v10 = vpop.xlane.xlu0 %269  ;;  %vm685_vm4 = vweird.f32 %v2051_v1 }
  0xa7   : > { %v398_v11 = vpop.xlane.xlu2 %397  ;;  %v1701_v12 = vpop.eup %1700  ;;  %v2065_v17 = vmul.f32 0.05263158, %v270_v10  ;;  %vm2081_vm7 = vmor %vm684_vm3, %vm685_vm4  ;;  %v1207_v10 = vsub.f32 %v2019_v45, %v1175_v42 }
  0xa8   : > { %v680_v21 = vmul.f32 %v2051_v1, %v679_v6  ;;  %v689_v22 = vmul.f32 %v1701_v12, %v647_v34  ;;  %v520_v23 = vmul.f32 0.05263158, %v398_v11  ;;  %v273_v25 = vpop.xlane.xlu1 %272  ;;  %vm695_vm6 = vweird.f32 %v1701_v12  ;;  %v2112_v11 = vld [vmem:[%s3177_s2] ss:$0 sm:$0xff] }
  0xa9   : > { %v552_v27 = vmul.f32 %v2065_v17, %v2065_v17  ;;  %v2077_v32 = vmul.f32 0.05263158, %v273_v25  ;;  %vm2094_vm8 = vmor %vm694_vm5, %vm695_vm6  ;;  %v1206_v6 = vsub.f32 %v1999_v24, %v1174_v30  ;;  %v307_v24 = vsel %vm261_vm2, %v1937_v49, 0.0 }
  0xaa   : > { %v681_v8 = vmul.f32 0.5, %v680_v21  ;;  %v690_v14 = vmul.f32 %v1701_v12, %v689_v22 }
  0xab   : > { %v584_v31 = vsub.f32 %v520_v23, %v552_v27  ;;  %356 = vadd.xlane.f32.xlu0 %v355_v26  ;;  %v553_v43 = vmul.f32 %v2077_v32, %v2077_v32  ;;  %v373_v27 = vmul.f32 %v1937_v49, %v1937_v49 }
  0xac   : > { %v682_v36 = vsub.f32 1.5, %v681_v8  ;;  %v691_v37 = vmul.f32 0.5, %v690_v14  ;;  %484 = vadd.xlane.f32.xlu2 %v483_v29  ;;  %v2138_v29 = vadd.f32 1e-05, %v630_v48  ;;  %v632_v8 = vmax.f32 %v600_v0, 0.0 }
  0xad   : > { %v616_v18 = vmax.f32 %v584_v31, 0.0  ;;  %481 = vadd.xlane.f32.xlu1 %v480_v28  ;;  %v435_v0 = vsel %vm261_vm2, %v373_v27, 0.0 }
  0xae   : > { %v2089_v44 = vpop.f32.mrf.mxu0  ;;  %v683_v40 = vmul.f32 %v2051_v1, %v682_v36  ;;  %v692_v47 = vsub.f32 1.5, %v691_v37  ;;  %v401_v34 = vpop.xlane.xlu0 %400  ;;  %v631_v37 = vmax.f32 %v599_v20, 0.0  ;;  %v2163_v15 = vadd.f32 1e-05, %v632_v8 }
  0xaf   : > { %v327_v53 = vpop.xlane.xlu2 %326  ;;  %v2098_v19 = vadd.f32 1e-05, %v616_v18  ;;  %v521_v55 = vmul.f32 0.05263158, %v401_v34 }
  0xb0   : > { %v693_v58 = vmul.f32 %v1701_v12, %v692_v47  ;;  %v324_v4 = vpop.xlane.xlu1 %323  ;;  %v687_v9 = vsel %vm2081_vm7, %v2051_v1, %v683_v40  ;;  %v2124_v25 = vmul.f32 0.05263158, %v327_v53  ;;  %v2168_v40 = vadd.f32 1e-05, %v631_v37 }
  0xb1   : > { %1702 = vrsqrt.f32 %v2098_v19  ;;  %v585_v21 = vsub.f32 %v521_v55, %v553_v43  ;;  %v2120_v1 = vmul.f32 0.05263158, %v324_v4  ;;  %v1238_v26 = vmul.f32 %v1206_v6, %v687_v9 }
  0xb2   : > { %v697_v22 = vsel %vm2094_vm8, %v1701_v12, %v693_v58  ;;  %v2148_v33 = vmul.f32 %v2124_v25, %v2124_v25  ;;  %v633_v43 = vmax.f32 %v601_v60, 0.0  ;;  %vm704_vm10 = vweird.f32 %v2098_v19 }
  0xb3   : > { %v1239_v45 = vmul.f32 %v1207_v10, %v697_v22  ;;  %v617_v23 = vmax.f32 %v585_v21, 0.0  ;;  %305 = vadd.xlane.f32.xlu0 %v304_v5  ;;  %v2133_v2 = vmul.f32 %v2120_v1, %v2120_v1  ;;  %v1274_v28 = vadd.f32 %v2112_v11, %v1238_v26 }
  0xb4   : > { %433 = vadd.xlane.f32.xlu2 %v432_v63  ;;  %v2179_v60 = vadd.f32 1e-05, %v633_v43  ;;  %v1176_v9 = vmul.f32 %v2063_v16, %v2065_v17 }
  0xb5   : > { %v1275_v61 = vadd.f32 %v2112_v11, %v1239_v45  ;;  %v2129_v62 = vadd.f32 1e-05, %v617_v23  ;;  %308 = vadd.xlane.f32.xlu1 %v307_v24  ;;  %v1306_v41 = vmax.f32 %v1274_v28, 0.0 }
  0xb6   : > { %v2135_v12 = vpop.f32.mrf.mxu0  ;;  %v452_v49 = vpop.xlane.xlu0 %451  ;;  %v1208_v27 = vsub.f32 %v2053_v3, %v1176_v9 }
  0xb7   : > { %v276_v14 = vpop.xlane.xlu2 %275  ;;  %v2143_v30 = vpop.eup %1702  ;;  %v1307_v31 = vmax.f32 %v1275_v61, 0.0  ;;  %1704 = vrsqrt.f32 %v2129_v62  ;;  %v538_v36 = vmul.f32 0.05263158, %v452_v49  ;;  %vm714_vm13 = vweird.f32 %v2129_v62 }
  0xb8   : > { %v699_v50 = vmul.f32 %v2143_v30, %v2098_v19  ;;  %v455_v56 = vpop.xlane.xlu1 %454  ;;  %1706 = vrsqrt.f32 %v2138_v29  ;;  %vm705_vm11 = vweird.f32 %v2143_v30  ;;  %v2175_v52 = vmul.f32 0.05263158, %v276_v14 }
  0xb9   : > { %v602_v42 = vsub.f32 %v538_v36, %v2133_v2  ;;  %v2157_v18 = vmul.f32 0.05263158, %v455_v56  ;;  %v1338_v13 = vpack.c.bf16 %v1307_v31, %v1306_v41  ;;  %1708 = vrsqrt.f32 %v2163_v15  ;;  %vm2196_vm12 = vmor %vm704_vm10, %vm705_vm11 }
  0xba   : > { %v700_v39 = vmul.f32 %v2143_v30, %v699_v50  ;;  %v554_v4 = vmul.f32 %v2175_v52, %v2175_v52  ;;  %1710 = vrsqrt.f32 %v2168_v40  ;;  %v1177_v61 = vmul.f32 %v2063_v16, %v2077_v32 }
  0xbb   : > { %v603_v20 = vsub.f32 %v2157_v18, %v2148_v33  ;;  %436 = vadd.xlane.f32.xlu0 %v435_v0  ;;  %1658 = vmatmul.msk.bf16.vlgmr.msra.gmra.mxu1 %vm1386_vm9, %v1338_v13  ;;  %1712 = vrsqrt.f32 %v2179_v60  ;;  %v634_v36 = vmax.f32 %v602_v42, 0.0  ;;  %v1013_v56 = vpack.c.bf16 %v2045_v59, %v2022_v46 }
  0xbc   : > { %v701_v47 = vmul.f32 0.5, %v700_v39  ;;  %v2260_v9 = vmul.f32 %v2063_v16, %v2175_v52  ;;  %vm874_vm10 = vweird.f32 %v2179_v60 }
  0xbd   : > { %v2171_v34 = vpop.eup %1704  ;;  %1641 = vmatmul.msk.bf16.gmra.mxu3 %vm261_vm2, %v1013_v56  ;;  %vm864_vm2 = vweird.f32 %v2163_v15 }
  0xbe   : > { %v2177_v35 = vpop.f32.mrf.mxu0  ;;  %v702_v53 = vsub.f32 1.5, %v701_v47  ;;  %v709_v54 = vmul.f32 %v2171_v34, %v2129_v62  ;;  %v279_v55 = vpop.xlane.xlu0 %278  ;;  %vm715_vm14 = vweird.f32 %v2171_v34  ;;  %v1209_v47 = vsub.f32 %v2089_v44, %v1177_v61 }
  0xbf   : > { %v407_v58 = vpop.xlane.xlu2 %406  ;;  %v2186_v5 = vmul.f32 0.05263158, %v279_v55  ;;  %v2203_v45 = vpop.eup %1706  ;;  %vm2218_vm15 = vmor %vm714_vm13, %vm715_vm14  ;;  %v1210_v18 = vsub.f32 %v2135_v12, %v2260_v9  ;;  %v1193_v9 = vmul.f32 %v2063_v16, %v2030_v51 }
  0xc0   : > { %v523_v63 = vmul.f32 0.05263158, %v407_v58  ;;  %v703_v6 = vmul.f32 %v2143_v30, %v702_v53  ;;  %v710_v21 = vmul.f32 %v2171_v34, %v709_v54  ;;  %v404_v48 = vpop.xlane.xlu1 %403  ;;  %v2214_v28 = vpop.eup %1708  ;;  %v839_v8 = vmul.f32 %v2203_v45, %v2138_v29 }
  0xc1   : > { %v555_v22 = vmul.f32 %v2186_v5, %v2186_v5  ;;  %v522_v24 = vmul.f32 0.05263158, %v404_v48  ;;  %v859_v13 = vmul.f32 %v2214_v28, %v2163_v15  ;;  %vm865_vm5 = vweird.f32 %v2214_v28 }
  0xc2   : > { %v711_v17 = vmul.f32 0.5, %v710_v21  ;;  %v707_v26 = vsel %vm2196_vm12, %v2143_v30, %v703_v6  ;;  %v2224_v30 = vpop.eup %1710  ;;  %v840_v46 = vmul.f32 %v2203_v45, %v839_v8  ;;  %v635_v21 = vmax.f32 %v603_v20, 0.0  ;;  %vm2322_vm6 = vmor %vm864_vm2, %vm865_vm5 }
  0xc3   : > { %v587_v19 = vsub.f32 %v523_v63, %v555_v22  ;;  %v586_v23 = vsub.f32 %v522_v24, %v554_v4  ;;  %v1240_v50 = vmul.f32 %v1208_v27, %v707_v26  ;;  %v2235_v39 = vpop.eup %1712  ;;  %v849_v59 = vmul.f32 %v2224_v30, %v2168_v40 }
  0xc4   : > { %v712_v2 = vsub.f32 1.5, %v711_v17  ;;  %v2256_v63 = vadd.f32 1e-05, %v634_v36  ;;  %v860_v10 = vmul.f32 %v2214_v28, %v859_v13  ;;  %v2273_v17 = vmul.f32 0.5, %v840_v46 }
  0xc5   : > { %v619_v49 = vmax.f32 %v587_v19, 0.0  ;;  %v618_v14 = vmax.f32 %v586_v23, 0.0  ;;  %v1276_v4 = vadd.f32 %v2112_v11, %v1240_v50  ;;  %v2276_v52 = vmul.f32 %v2224_v30, %v849_v59 }
  0xc6   : > { %v2222_v31 = vpop.f32.mrf.mxu0  ;;  %v713_v3 = vmul.f32 %v2171_v34, %v712_v2  ;;  %v330_v32 = vpop.xlane.xlu0 %329  ;;  %v2288_v8 = vadd.f32 1e-05, %v635_v21  ;;  %v1179_v36 = vmul.f32 %v2063_v16, %v2186_v5  ;;  %v842_v50 = vsub.f32 1.5, %v2273_v17 }
  0xc7   : > { %v458_v37 = vpop.xlane.xlu2 %457  ;;  %v2229_v0 = vadd.f32 1e-05, %v619_v49  ;;  %v2231_v41 = vadd.f32 1e-05, %v618_v14  ;;  %v2233_v43 = vmul.f32 0.05263158, %v330_v32  ;;  %vm875_vm11 = vweird.f32 %v2235_v39 }
  0xc8   : > { %v540_v42 = vmul.f32 0.05263158, %v458_v37  ;;  %v333_v53 = vpop.xlane.xlu1 %332  ;;  %v717_v54 = vsel %vm2218_vm15, %v2171_v34, %v713_v3  ;;  %v869_v34 = vmul.f32 %v2235_v39, %v2179_v60  ;;  %v1308_v26 = vmax.f32 %v1276_v4, 0.0  ;;  %vm2395_vm12 = vmor %vm874_vm10, %vm875_vm11 }
  0xc9   : > { %1714 = vrsqrt.f32 %v2229_v0  ;;  %v572_v55 = vmul.f32 %v2233_v43, %v2233_v43  ;;  %v2251_v44 = vmul.f32 0.05263158, %v333_v53  ;;  %v1241_v58 = vmul.f32 %v1209_v47, %v717_v54 }
  0xca   : > { %1716 = vrsqrt.f32 %v2231_v41  ;;  %v870_v33 = vmul.f32 %v2235_v39, %v869_v34  ;;  %v861_v3 = vmul.f32 0.5, %v860_v10  ;;  %vm734_vm0 = vweird.f32 %v2229_v0  ;;  %v1135_v34 = vpop.f32.mrf.mxu3 }
  0xcb   : > { %v604_v6 = vsub.f32 %v540_v42, %v572_v55  ;;  %v1277_v48 = vadd.f32 %v2112_v11, %v1241_v58  ;;  %v2269_v22 = vmul.f32 %v2251_v44, %v2251_v44  ;;  %1718 = vrsqrt.f32 %v2256_v63 }
  0xcc   : > { %vm724_vm1 = vweird.f32 %v2231_v41  ;;  %v862_v42 = vsub.f32 1.5, %v861_v3  ;;  %1720 = vrsqrt.f32 %v2288_v8 }
  0xcd   : > { %v1309_v27 = vmax.f32 %v1277_v48, 0.0  ;;  %v636_v13 = vmax.f32 %v604_v6, 0.0 }
  0xce   : > { %v2271_v24 = vpop.f32.mrf.mxu0  ;;  %v461_v19 = vpop.xlane.xlu0 %460  ;;  %v863_v4 = vmul.f32 %v2214_v28, %v862_v42 }
  0xcf   : > { %v285_v23 = vpop.xlane.xlu2 %284  ;;  %v2278_v61 = vpop.eup %1714  ;;  %v2284_v20 = vmul.f32 0.05263158, %v461_v19  ;;  %v1339_v14 = vpack.c.bf16 %v1309_v27, %v1308_v26  ;;  %v871_v19 = vmul.f32 0.5, %v870_v33 }
  0xd0   : > { %v2286_v2 = vpop.eup %1716  ;;  %v729_v62 = vmul.f32 %v2278_v61, %v2229_v0  ;;  %v282_v49 = vpop.xlane.xlu1 %281  ;;  %vm735_vm3 = vweird.f32 %v2278_v61  ;;  %v2309_v54 = vmul.f32 0.05263158, %v285_v23  ;;  %v1211_v23 = vsub.f32 %v2177_v35, %v1179_v36 }
  0xd1   : > { %v719_v32 = vmul.f32 %v2286_v2, %v2231_v41  ;;  %v605_v37 = vsub.f32 %v2284_v20, %v2269_v22  ;;  %1659 = vmatmul.msk.bf16.gmra.mxu1 %vm1386_vm9, %v1339_v14  ;;  %v2304_v5 = vmul.f32 0.05263158, %v282_v49  ;;  %vm725_vm4 = vweird.f32 %v2286_v2  ;;  %v2311_v46 = vpop.eup %1718  ;;  %vm2333_vm7 = vmor %vm734_vm0, %vm735_vm3 }
  0xd2   : > { %v730_v56 = vmul.f32 %v2278_v61, %v729_v62  ;;  %v1192_v22 = vmul.f32 %v2063_v16, %v2014_v38  ;;  %v557_v15 = vmul.f32 %v2309_v54, %v2309_v54  ;;  %vm2344_vm8 = vmor %vm724_vm1, %vm725_vm4  ;;  %v2348_v35 = vadd.f32 1e-05, %v636_v13  ;;  %v1137_v26 = vpop.f32.mrf.mxu3 }
  0xd3   : > { %v720_v47 = vmul.f32 %v2286_v2, %v719_v32  ;;  %v556_v55 = vmul.f32 %v2304_v5, %v2304_v5  ;;  %v867_v33 = vsel %vm2322_vm6, %v2214_v28, %v863_v4  ;;  %v879_v14 = vmul.f32 %v2311_v46, %v2256_v63  ;;  %v2366_v4 = vpop.eup %1720 }
  0xd4   : > { %v731_v53 = vmul.f32 0.5, %v730_v56  ;;  %v1224_v49 = vsub.f32 %v1135_v34, %v1192_v22  ;;  %1722 = vrsqrt.f32 %v2348_v35  ;;  %v889_v51 = vmul.f32 %v2366_v4, %v2288_v8 }
  0xd5   : > { %v721_v59 = vmul.f32 0.5, %v720_v47  ;;  %v872_v47 = vsub.f32 1.5, %v871_v19  ;;  %vm884_vm1 = vweird.f32 %v2256_v63  ;;  %vm885_vm3 = vweird.f32 %v2311_v46 }
  0xd6   : > { %v2315_v58 = vpop.f32.mrf.mxu0  ;;  %v732_v6 = vsub.f32 1.5, %v731_v53  ;;  %v410_v10 = vpop.xlane.xlu0 %409  ;;  %v2361_v13 = vmul.f32 %v1224_v49, %v867_v33  ;;  %vm2496_vm4 = vmor %vm884_vm1, %vm885_vm3  ;;  %vm894_vm6 = vweird.f32 %v2288_v8  ;;  %vm904_vm11 = vweird.f32 %v2348_v35 }
  0xd7   : > { %v336_v21 = vpop.xlane.xlu2 %335  ;;  %v722_v27 = vsub.f32 1.5, %v721_v59  ;;  %v524_v20 = vmul.f32 0.05263158, %v410_v10  ;;  %v873_v12 = vmul.f32 %v2235_v39, %v872_v47  ;;  %v2419_v47 = vmul.f32 %v2063_v16, %v2304_v5 }
  0xd8   : > { %v733_v62 = vmul.f32 %v2278_v61, %v732_v6  ;;  %v413_v0 = vpop.xlane.xlu1 %412  ;;  %v2356_v41 = vmul.f32 0.05263158, %v336_v21  ;;  %v637_v21 = vmax.f32 %v605_v37, 0.0  ;;  %v2436_v5 = vmul.f32 %v2063_v16, %v1943_v57 }
  0xd9   : > { %v723_v3 = vmul.f32 %v2286_v2, %v722_v27  ;;  %v588_v36 = vsub.f32 %v524_v20, %v556_v55  ;;  %v525_v32 = vmul.f32 0.05263158, %v413_v0  ;;  %vm854_vm1 = vweird.f32 %v2168_v40 }
  0xda   : > { %v737_v56 = vsel %vm2333_vm7, %v2278_v61, %v733_v62  ;;  %v851_v61 = vmul.f32 0.5, %v2276_v52  ;;  %v2387_v52 = vmul.f32 %v2356_v41, %v2356_v41  ;;  %v2406_v33 = vpop.eup %1722  ;;  %v2408_v49 = vadd.f32 1e-05, %v637_v21 }
  0xdb   : > { %v620_v42 = vmax.f32 %v588_v36, 0.0  ;;  %v589_v53 = vsub.f32 %v525_v32, %v557_v15  ;;  %v727_v28 = vsel %vm2344_vm8, %v2286_v2, %v723_v3  ;;  %v1243_v59 = vmul.f32 %v1211_v23, %v737_v56 }
  0xdc   : > { %v1242_v55 = vmul.f32 %v1210_v18, %v727_v28  ;;  %v852_v60 = vsub.f32 1.5, %v851_v61  ;;  %v877_v36 = vsel %vm2395_vm12, %v2235_v39, %v873_v12  ;;  %v1225_v32 = vsub.f32 %v1137_v26, %v1193_v9 }
  0xdd   : > { %v2374_v34 = vadd.f32 1e-05, %v620_v42  ;;  %v621_v6 = vmax.f32 %v589_v53, 0.0  ;;  %v1279_v2 = vadd.f32 %v2112_v11, %v1243_v59  ;;  %v2415_v56 = vmul.f32 %v2063_v16, %v2309_v54 }
  0xde   : > { %v2376_v10 = vpop.f32.mrf.mxu0  ;;  %v339_v48 = vpop.xlane.xlu0 %338  ;;  %v1278_v19 = vadd.f32 %v2112_v11, %v1242_v55  ;;  %v880_v28 = vmul.f32 %v2311_v46, %v879_v14  ;;  %v1257_v59 = vmul.f32 %v1225_v32, %v877_v36  ;;  %v2432_v54 = vmul.f32 %v2203_v45, %v842_v50 }
  0xdf   : > { %v467_v22 = vpop.xlane.xlu2 %466  ;;  %1724 = vrsqrt.f32 %v2374_v34  ;;  %v2389_v18 = vadd.f32 1e-05, %v621_v6  ;;  %v2391_v23 = vmul.f32 0.05263158, %v339_v48  ;;  %v1311_v62 = vmax.f32 %v1279_v2, 0.0 }
  0xe0   : > { %v543_v27 = vmul.f32 0.05263158, %v467_v22  ;;  %v464_v15 = vpop.xlane.xlu1 %463  ;;  %v1310_v20 = vmax.f32 %v1278_v19, 0.0  ;;  %v2440_v61 = vmul.f32 %v2063_v16, %v1968_v7  ;;  %v890_v14 = vmul.f32 %v2366_v4, %v889_v51 }
  0xe1   : > { %1726 = vrsqrt.f32 %v2389_v18  ;;  %v575_v38 = vmul.f32 %v2391_v23, %v2391_v23  ;;  %v2404_v0 = vmul.f32 0.05263158, %v464_v15  ;;  %v2447_v50 = vmul.f32 %v2224_v30, %v852_v60 }
  0xe2   : > { %v1340_v3 = vpack.c.bf16 %v1311_v62, %v1310_v20  ;;  %1728 = vrsqrt.f32 %v2408_v49  ;;  %v2453_v57 = vmul.f32 %v2406_v33, %v2348_v35  ;;  %v1213_v7 = vsub.f32 %v2271_v24, %v2415_v56  ;;  %v1140_v62 = vpop.f32.mrf.mxu3 }
  0xe3   : > { %v607_v42 = vsub.f32 %v543_v27, %v575_v38  ;;  %v606_v53 = vsub.f32 %v2404_v0, %v2387_v52  ;;  %v1212_v48 = vsub.f32 %v2222_v31, %v2419_v47  ;;  %v881_v37 = vmul.f32 0.5, %v880_v28 }
  0xe4   : > { %1660 = vmatmul.msk.bf16.gmra.mxu1 %vm1386_vm9, %v1340_v3  ;;  %vm744_vm13 = vweird.f32 %v2374_v34  ;;  %vm754_vm14 = vweird.f32 %v2389_v18  ;;  %v2470_v31 = vadd.f32 %v2112_v11, %v2361_v13  ;;  %v891_v38 = vmul.f32 0.5, %v890_v14 }
  0xe5   : > { %v2425_v55 = vpop.eup %1724  ;;  %v639_v27 = vmax.f32 %v607_v42, 0.0  ;;  %v882_v36 = vsub.f32 1.5, %v881_v37  ;;  %v1194_v42 = vmul.f32 %v2063_v16, %v2120_v1  ;;  %v638_v37 = vmax.f32 %v606_v53, 0.0 }
  0xe6   : > { %v2427_v39 = vpop.f32.mrf.mxu0  ;;  %v739_v6 = vmul.f32 %v2425_v55, %v2374_v34  ;;  %v288_v2 = vpop.xlane.xlu0 %287  ;;  %vm745_vm15 = vweird.f32 %v2425_v55  ;;  %vm895_vm7 = vweird.f32 %v2366_v4  ;;  %vm905_vm12 = vweird.f32 %v2406_v33 }
  0xe7   : > { %v416_v17 = vpop.xlane.xlu2 %415  ;;  %v2449_v21 = vpop.eup %1726  ;;  %v2459_v22 = vmul.f32 0.05263158, %v288_v2  ;;  %vm2482_vm2 = vmor %vm744_vm13, %vm745_vm15  ;;  %v883_v2 = vmul.f32 %v2311_v46, %v882_v36  ;;  %v892_v36 = vsub.f32 1.5, %v891_v38  ;;  %vm845_vm15 = vweird.f32 %v2203_v45 }
  0xe8   : > { %v740_v19 = vmul.f32 %v2425_v55, %v739_v6  ;;  %v749_v12 = vmul.f32 %v2449_v21, %v2389_v18  ;;  %v526_v9 = vmul.f32 0.05263158, %v416_v17  ;;  %v291_v52 = vpop.xlane.xlu1 %290  ;;  %vm755_vm0 = vweird.f32 %v2449_v21  ;;  %v2477_v0 = vpop.eup %1728  ;;  %vm2559_vm8 = vmor %vm894_vm6, %vm895_vm7 }
  0xe9   : > { %v558_v24 = vmul.f32 %v2459_v22, %v2459_v22  ;;  %v2475_v20 = vmul.f32 0.05263158, %v291_v52  ;;  %v1293_v6 = vadd.f32 %v2112_v11, %v1257_v59  ;;  %vm2506_vm5 = vmor %vm754_vm14, %vm755_vm0  ;;  %v1324_v59 = vmax.f32 %v2470_v31, 0.0 }
  0xea   : > { %v741_v26 = vmul.f32 0.5, %v740_v19  ;;  %v750_v51 = vmul.f32 %v2449_v21, %v749_v12  ;;  %v909_v19 = vmul.f32 %v2477_v0, %v2408_v49  ;;  %v2571_v8 = vmul.f32 %v2063_v16, %v2459_v22  ;;  %vm2610_vm0 = vmor %vm904_vm11, %vm905_vm12 }
  0xeb   : > { %v590_v15 = vsub.f32 %v526_v9, %v558_v24  ;;  %v559_v56 = vmul.f32 %v2475_v20, %v2475_v20  ;;  %v1325_v31 = vmax.f32 %v1293_v6, 0.0  ;;  %v893_v6 = vmul.f32 %v2366_v4, %v892_v36 }
  0xec   : > { %v742_v60 = vsub.f32 1.5, %v741_v26  ;;  %v751_v3 = vmul.f32 0.5, %v750_v51  ;;  %v1226_v51 = vsub.f32 %v1140_v62, %v1194_v42  ;;  %vm844_vm14 = vweird.f32 %v2138_v29 }
  0xed   : > { %v622_v32 = vmax.f32 %v590_v15, 0.0  ;;  %v2517_v15 = vadd.f32 1e-05, %v639_v27  ;;  %vm2679_vm7 = vmor %vm844_vm14, %vm845_vm15 }
  0xee   : > { %v2488_v47 = vpop.f32.mrf.mxu0  ;;  %v743_v28 = vmul.f32 %v2425_v55, %v742_v60  ;;  %v752_v63 = vsub.f32 1.5, %v751_v3  ;;  %v419_v14 = vpop.xlane.xlu0 %418  ;;  %v887_v60 = vsel %vm2496_vm4, %v2311_v46, %v883_v2  ;;  %v2550_v2 = vpack.c.bf16 %v1325_v31, %v1324_v59 }
  0xef   : > { %v345_v34 = vpop.xlane.xlu2 %344  ;;  %v2510_v12 = vadd.f32 1e-05, %v622_v32  ;;  %v527_v9 = vmul.f32 0.05263158, %v419_v14  ;;  %v2530_v32 = vadd.f32 1e-05, %v638_v37  ;;  %v2534_v42 = vmul.f32 %v1226_v51, %v887_v60 }
  0xf0   : > { %v753_v52 = vmul.f32 %v2449_v21, %v752_v63  ;;  %v342_v24 = vpop.xlane.xlu1 %341  ;;  %v747_v26 = vsel %vm2482_vm2, %v2425_v55, %v743_v28  ;;  %v2528_v55 = vmul.f32 0.05263158, %v345_v34  ;;  %v2547_v63 = vmul.f32 %v2477_v0, %v909_v19 }
  0xf1   : > { %1730 = vrsqrt.f32 %v2510_v12  ;;  %v591_v18 = vsub.f32 %v527_v9, %v559_v56  ;;  %v2523_v3 = vmul.f32 0.05263158, %v342_v24  ;;  %v1244_v27 = vmul.f32 %v1212_v48, %v747_v26 }
  0xf2   : > { %v757_v53 = vsel %vm2506_vm5, %v2449_v21, %v753_v52  ;;  %v900_v48 = vmul.f32 %v2406_v33, %v2453_v57  ;;  %v577_v1 = vmul.f32 %v2528_v55, %v2528_v55  ;;  %v1195_v19 = vmul.f32 %v2063_v16, %v2124_v25 }
  0xf3   : > { %v623_v13 = vmax.f32 %v591_v18, 0.0  ;;  %v1245_v62 = vmul.f32 %v1213_v7, %v757_v53  ;;  %v576_v56 = vmul.f32 %v2523_v3, %v2523_v3  ;;  %v1280_v21 = vadd.f32 %v2112_v11, %v1244_v27  ;;  %v1142_v7 = vpop.f32.mrf.mxu3 }
  0xf4   : > { %v2576_v25 = vmul.f32 %v2063_v16, %v2475_v20  ;;  %v897_v31 = vsel %vm2559_vm8, %v2366_v4, %v893_v6  ;;  %vm764_vm10 = vweird.f32 %v2510_v12  ;;  %v901_v27 = vmul.f32 0.5, %v900_v48 }
  0xf5   : > { %v2537_v46 = vadd.f32 1e-05, %v623_v13  ;;  %v1281_v38 = vadd.f32 %v2112_v11, %v1245_v62  ;;  %v1312_v37 = vmax.f32 %v1280_v21, 0.0  ;;  %v1227_v13 = vsub.f32 %v1142_v7, %v1195_v19 }
  0xf6   : > { %v2539_v28 = vpop.f32.mrf.mxu0  ;;  %v470_v14 = vpop.xlane.xlu0 %469  ;;  %v1196_v57 = vmul.f32 %v2063_v16, %v2233_v43  ;;  %v1214_v43 = vsub.f32 %v2315_v58, %v2571_v8  ;;  %vm855_vm2 = vweird.f32 %v2224_v30  ;;  %vm914_vm8 = vweird.f32 %v2408_v49 }
  0xf7   : > { %v294_v34 = vpop.xlane.xlu2 %293  ;;  %v2552_v17 = vpop.eup %1730  ;;  %1732 = vrsqrt.f32 %v2537_v46  ;;  %v544_v9 = vmul.f32 0.05263158, %v470_v14  ;;  %v1313_v24 = vmax.f32 %v1281_v38, 0.0  ;;  %v1259_v21 = vmul.f32 %v1227_v13, %v897_v31  ;;  %vm2702_vm11 = vmor %vm854_vm1, %vm855_vm2 }
  0xf8   : > { %1734 = vrsqrt.f32 %v2517_v15  ;;  %v759_v59 = vmul.f32 %v2552_v17, %v2510_v12  ;;  %v473_v52 = vpop.xlane.xlu1 %472  ;;  %vm765_vm13 = vweird.f32 %v2552_v17  ;;  %v2590_v4 = vmul.f32 0.05263158, %v294_v34 }
  0xf9   : > { %1736 = vrsqrt.f32 %v2530_v32  ;;  %v608_v26 = vsub.f32 %v544_v9, %v576_v56  ;;  %v545_v51 = vmul.f32 0.05263158, %v473_v52  ;;  %v1341_v60 = vpack.c.bf16 %v1313_v24, %v1312_v37  ;;  %vm2629_vm3 = vmor %vm764_vm10, %vm765_vm13 }
  0xfa   : > { %v760_v18 = vmul.f32 %v2552_v17, %v759_v59  ;;  %v902_v9 = vsub.f32 1.5, %v901_v27  ;;  %v560_v19 = vmul.f32 %v2590_v4, %v2590_v4  ;;  %v1294_v31 = vadd.f32 %v2112_v11, %v2534_v42 }
  0xfb   : > { %v640_v53 = vmax.f32 %v608_v26, 0.0  ;;  %v609_v36 = vsub.f32 %v545_v51, %v577_v1  ;;  %1661 = vmatmul.msk.bf16.gmra.mxu1 %vm1386_vm9, %v1341_v60  ;;  %v1145_v38 = vpop.f32.mrf.mxu3  ;;  %v1215_v26 = vsub.f32 %v2376_v10, %v2576_v25  ;;  %vm774_vm4 = vweird.f32 %v2537_v46 }
  0xfc   : > { %v761_v22 = vmul.f32 0.5, %v760_v18  ;;  %v903_v60 = vmul.f32 %v2406_v33, %v902_v9  ;;  %v1228_v25 = vsub.f32 %v1145_v38, %v1196_v57  ;;  %v1295_v12 = vadd.f32 %v2112_v11, %v1259_v21 }
  0xfd   : > { %v2585_v20 = vpop.eup %1732  ;;  %v2588_v62 = vadd.f32 1e-05, %v640_v53  ;;  %v641_v59 = vmax.f32 %v609_v36, 0.0  ;;  %vm915_vm10 = vweird.f32 %v2477_v0 }
  0xfe   : > { %v2592_v56 = vpop.f32.mrf.mxu0  ;;  %v2594_v7 = vpop.eup %1734  ;;  %v762_v14 = vsub.f32 1.5, %v761_v22  ;;  %v769_v48 = vmul.f32 %v2585_v20, %v2537_v46  ;;  %v907_v8 = vsel %vm2610_vm0, %v2406_v33, %v903_v60  ;;  %vm775_vm5 = vweird.f32 %v2585_v20  ;;  %vm2712_vm12 = vmor %vm914_vm8, %vm915_vm10 }
  0xff   : > { %v297_v6 = vpop.xlane.xlu0 %296  ;;  %v425_v1 = vpop.xlane.xlu2 %424  ;;  %1738 = vrsqrt.f32 %v2588_v62  ;;  %v2638_v42 = vadd.f32 1e-05, %v641_v59  ;;  %vm2657_vm6 = vmor %vm774_vm4, %vm775_vm5  ;;  %v1197_v46 = vmul.f32 %v2063_v16, %v2251_v44  ;;  %v2687_v44 = vmul.f32 %v2063_v16, %v2590_v4 }
 0x100   : > { %v2602_v34 = vpop.eup %1736  ;;  %v497_v52 = vmul.f32 0.05263158, %v297_v6  ;;  %v529_v37 = vmul.f32 0.05263158, %v425_v1  ;;  %v770_v51 = vmul.f32 %v2585_v20, %v769_v48  ;;  %v422_v18 = vpop.xlane.xlu1 %421  ;;  %v763_v35 = vmul.f32 %v2552_v17, %v762_v14 }
 0x101   : > { %v528_v36 = vmul.f32 0.05263158, %v422_v18  ;;  %v2642_v14 = vmul.f32 %v1228_v25, %v907_v8  ;;  %v929_v48 = vmul.f32 %v2594_v7, %v2517_v15  ;;  %v919_v9 = vmul.f32 %v2602_v34, %v2530_v32 }
 0x102   : > { %v561_v53 = vmul.f32 %v497_v52, %v497_v52  ;;  %v771_v10 = vmul.f32 0.5, %v770_v51  ;;  %v767_v38 = vsel %vm2629_vm3, %v2552_v17, %v763_v35  ;;  %1740 = vrsqrt.f32 %v2638_v42 }
 0x103   : > { %v592_v22 = vsub.f32 %v528_v36, %v560_v19  ;;  %v1326_v19 = vmax.f32 %v1294_v31, 0.0  ;;  %v1147_v60 = vpop.f32.mrf.mxu3  ;;  %v1327_v35 = vmax.f32 %v1295_v12, 0.0  ;;  %v1246_v36 = vmul.f32 %v1214_v43, %v767_v38 }
 0x104   : > { %v593_v13 = vsub.f32 %v529_v37, %v561_v53  ;;  %v772_v27 = vsub.f32 1.5, %v771_v10  ;;  %v911_v37 = vmul.f32 0.5, %v2547_v63  ;;  %v2696_v8 = vmul.f32 %v2063_v16, %v497_v52 }
 0x105   : > { %v624_v1 = vmax.f32 %v592_v22, 0.0  ;;  %v2670_v63 = vpop.eup %1738  ;;  %v847_v16 = vsel %vm2679_vm7, %v2203_v45, %v2432_v54  ;;  %v1229_v52 = vsub.f32 %v1147_v60, %v1197_v46  ;;  %vm924_vm3 = vweird.f32 %v2530_v32 }
 0x106   : > { %v625_v6 = vmax.f32 %v593_v13, 0.0  ;;  %v2646_v33 = vpop.f32.mrf.mxu0  ;;  %v773_v57 = vmul.f32 %v2585_v20, %v772_v27  ;;  %v912_v49 = vsub.f32 1.5, %v911_v37  ;;  %v939_v22 = vmul.f32 %v2670_v63, %v2588_v62 }
 0x107   : > { %v348_v21 = vpop.xlane.xlu0 %347  ;;  %v476_v59 = vpop.xlane.xlu2 %475  ;;  %v2664_v17 = vadd.f32 1e-05, %v624_v1  ;;  %vm925_vm4 = vweird.f32 %v2602_v34  ;;  %v3227_v32 = vsel %vm2702_vm11, %v2224_v30, %v2447_v50  ;;  %vm935_vm7 = vweird.f32 %v2594_v7 }
 0x108   : > { %v2662_v51 = vadd.f32 1e-05, %v625_v6  ;;  %v2666_v18 = vmul.f32 0.05263158, %v348_v21  ;;  %v546_v31 = vmul.f32 0.05263158, %v476_v59  ;;  %v351_v53 = vpop.xlane.xlu1 %350  ;;  %v777_v29 = vsel %vm2657_vm6, %v2585_v20, %v773_v57  ;;  %v2718_v40 = vpop.eup %1740  ;;  %vm2852_vm5 = vmor %vm924_vm3, %vm925_vm4 }
 0x109   : > { %v2690_v43 = vmul.f32 0.05263158, %v351_v53  ;;  %v1247_v13 = vmul.f32 %v1215_v26, %v777_v29  ;;  %v2716_v26 = vpack.c.bf16 %v1327_v35, %v1326_v19  ;;  %v1282_v6 = vadd.f32 %v2112_v11, %v1246_v36 }
 0x10a   : > { %1742 = vrsqrt.f32 %v2662_v51  ;;  %v578_v58 = vmul.f32 %v2666_v18, %v2666_v18  ;;  %v913_v38 = vmul.f32 %v2477_v0, %v912_v49  ;;  %v2728_v57 = vmul.f32 %v2594_v7, %v929_v48 }
 0x10b   : > { %1744 = vrsqrt.f32 %v2664_v17  ;;  %3217 = vst [vmem:[#allocation2_spill] sm:$0xff] %v2716_v26  ;;  %v579_v27 = vmul.f32 %v2690_v43, %v2690_v43  ;;  %v1283_v1 = vadd.f32 %v2112_v11, %v1247_v13  ;;  %v920_v21 = vmul.f32 %v2602_v34, %v919_v9  ;;  %v2744_v53 = vpop.f32.mrf.mxu3 }
 0x10c   : > { %v610_v25 = vsub.f32 %v546_v31, %v578_v58  ;;  %v917_v9 = vsel %vm2712_vm12, %v2477_v0, %v913_v38  ;;  %v2752_v58 = vadd.f32 %v2112_v11, %v2642_v14  ;;  %v2755_v49 = vmul.f32 %v2670_v63, %v939_v22 }
 0x10d   : > { %v1261_v13 = vmul.f32 %v1229_v52, %v917_v9  ;;  %v1314_v38 = vmax.f32 %v1282_v6, 0.0  ;;  %vm794_vm13 = vweird.f32 %v2662_v51  ;;  %vm784_vm15 = vweird.f32 %v2664_v17 }
 0x10e   : > { %v2722_v12 = vpop.f32.mrf.mxu0  ;;  %v642_v19 = vmax.f32 %v610_v25, 0.0  ;;  %v1315_v25 = vmax.f32 %v1283_v1, 0.0  ;;  %vm934_vm6 = vweird.f32 %v2517_v15  ;;  %vm954_vm4 = vweird.f32 %v2638_v42 }
 0x10f   : > { %3218 = vst [vmem:[#allocation3_spill] sm:$0xff] %v2722_v12  ;;  %v479_v59 = vpop.xlane.xlu0 %478  ;;  %v303_v37 = vpop.xlane.xlu2 %302  ;;  %vm2906_vm8 = vmor %vm934_vm6, %vm935_vm7 }
 0x110   : > { %v2735_v60 = vpop.eup %1742  ;;  %v547_v48 = vmul.f32 0.05263158, %v479_v59  ;;  %v300_v29 = vpop.xlane.xlu1 %299  ;;  %v2761_v59 = vmul.f32 %v2718_v40, %v2638_v42  ;;  %v2765_v14 = vadd.f32 1e-05, %v642_v19  ;;  %v499_v1 = vmul.f32 0.05263158, %v303_v37 }
 0x111   : > { %v2746_v36 = vpop.eup %1744  ;;  %v789_v46 = vmul.f32 %v2735_v60, %v2662_v51  ;;  %v498_v22 = vmul.f32 0.05263158, %v300_v29  ;;  %v1342_v9 = vpack.c.bf16 %v1315_v25, %v1314_v38  ;;  %vm795_vm14 = vweird.f32 %v2735_v60 }
 0x112   : > { %v779_v0 = vmul.f32 %v2746_v36, %v2664_v17  ;;  %v611_v20 = vsub.f32 %v547_v48, %v579_v27  ;;  %vm785_vm0 = vweird.f32 %v2746_v36  ;;  %v921_v19 = vmul.f32 0.5, %v920_v21  ;;  %vm2779_vm1 = vmor %vm794_vm13, %vm795_vm14  ;;  %v2786_v21 = vld [vmem:[%s3178_s3] ss:$0 sm:$0xff] }
 0x113   : > { %v790_v24 = vmul.f32 %v2735_v60, %v789_v46  ;;  %v562_v48 = vmul.f32 %v498_v22, %v498_v22  ;;  %1662 = vmatmul.msk.bf16.gmra.mxu1 %vm1386_vm9, %v1342_v9  ;;  %1746 = vrsqrt.f32 %v2765_v14  ;;  %v563_v38 = vmul.f32 %v499_v1, %v499_v1  ;;  %vm2796_vm2 = vmor %vm784_vm15, %vm785_vm0  ;;  %v2810_v26 = vpop.f32.mrf.mxu3 }
 0x114   : > { %v780_v52 = vmul.f32 %v2746_v36, %v779_v0  ;;  %v643_v27 = vmax.f32 %v611_v20, 0.0  ;;  %v922_v17 = vsub.f32 1.5, %v921_v19  ;;  %v2813_v12 = vmul.f32 %v2786_v21, %v498_v22 }
 0x115   : > { %v791_v35 = vmul.f32 0.5, %v790_v24  ;;  %vm944_vm15 = vweird.f32 %v2588_v62  ;;  %v1201_v42 = vmul.f32 %v2786_v21, %v2528_v55  ;;  %vm964_vm7 = vweird.f32 %v2765_v14 }
 0x116   : > { %v781_v6 = vmul.f32 0.5, %v780_v52  ;;  %v1130_v46 = vpop.f32.mrf.mxu0  ;;  %v2800_v9 = vadd.f32 1e-05, %v643_v27  ;;  %v2816_v27 = vadd.f32 %v2112_v11, %v1261_v13 }
 0x117   : > { %v792_v31 = vsub.f32 1.5, %v791_v35  ;;  %v1222_v24 = vsub.f32 %v1130_v46, %v2436_v5  ;;  %v428_v29 = vpop.xlane.xlu0 %427  ;;  %v354_v25 = vpop.xlane.xlu2 %353  ;;  %v2789_v35 = vmul.f32 %v2786_v21, %v499_v1 }
 0x118   : > { %v782_v20 = vsub.f32 1.5, %v781_v6  ;;  %v530_v5 = vmul.f32 0.05263158, %v428_v29  ;;  %v431_v6 = vpop.xlane.xlu1 %430  ;;  %v2807_v46 = vmul.f32 0.05263158, %v354_v25  ;;  %1748 = vrsqrt.f32 %v2800_v9 }
 0x119   : > { %v793_v52 = vmul.f32 %v2735_v60, %v792_v31  ;;  %v1254_v1 = vmul.f32 %v1222_v24, %v847_v16  ;;  %v531_v37 = vmul.f32 0.05263158, %v431_v6  ;;  %v2828_v19 = vpop.eup %1746 }
 0x11a   : > { %v783_v31 = vmul.f32 %v2746_v36, %v782_v20  ;;  %v594_v29 = vsub.f32 %v530_v5, %v562_v48  ;;  %v3223_v48 = vsub.f32 %v2488_v47, %v2696_v8  ;;  %v580_v11 = vmul.f32 %v2807_v46, %v2807_v46  ;;  %v2846_v20 = vld [vmem:[%s3177_s2] ss:$0 sm:$0xff] }
 0x11b   : > { %v797_v45 = vsel %vm2779_vm1, %v2735_v60, %v793_v52  ;;  %v595_v10 = vsub.f32 %v531_v37, %v563_v38  ;;  %v3224_v60 = vsub.f32 %v2427_v39, %v2687_v44  ;;  %v923_v47 = vmul.f32 %v2602_v34, %v922_v17 }
 0x11c   : > { %v626_v54 = vmax.f32 %v594_v29, 0.0  ;;  %v787_v16 = vsel %vm2796_vm2, %v2746_v36, %v783_v31  ;;  %v1249_v22 = vmul.f32 %v3223_v48, %v797_v45  ;;  %v1198_v8 = vmul.f32 %v2786_v21, %v2356_v41 }
 0x11d   : > { %v1248_v13 = vmul.f32 %v3224_v60, %v787_v16  ;;  %v627_v36 = vmax.f32 %v595_v10, 0.0  ;;  %v931_v41 = vmul.f32 0.5, %v2728_v57  ;;  %v959_v6 = vmul.f32 %v2828_v19, %v2765_v14  ;;  %v2876_v10 = vpop.f32.mrf.mxu3 }
 0x11e   : > { %v2837_v37 = vadd.f32 1e-05, %v626_v54  ;;  %v1132_v24 = vpop.f32.mrf.mxu0  ;;  %v1285_v44 = vadd.f32 %v2846_v20, %v1249_v22  ;;  %v927_v54 = vsel %vm2852_vm5, %v2602_v34, %v923_v47  ;;  %v2878_v4 = vpop.eup %1748  ;;  %v1230_v16 = vsub.f32 %v2744_v53, %v1198_v8 }
 0x11f   : > { %v1223_v25 = vsub.f32 %v1132_v24, %v2440_v61  ;;  %v357_v0 = vpop.xlane.xlu0 %356  ;;  %v1284_v39 = vadd.f32 %v2846_v20, %v1248_v13  ;;  %v1290_v61 = vadd.f32 %v2846_v20, %v1254_v1  ;;  %v2859_v5 = vadd.f32 1e-05, %v627_v36  ;;  %v485_v51 = vpop.xlane.xlu2 %484 }
 0x120   : > { %1750 = vrsqrt.f32 %v2837_v37  ;;  %v2861_v52 = vmul.f32 0.05263158, %v357_v0  ;;  %v482_v29 = vpop.xlane.xlu1 %481  ;;  %v549_v57 = vmul.f32 0.05263158, %v485_v51  ;;  %v1317_v50 = vmax.f32 %v1285_v44, 0.0 }
 0x121   : > { %v1255_v31 = vmul.f32 %v1223_v25, %v3227_v32  ;;  %v1316_v17 = vmax.f32 %v1284_v39, 0.0  ;;  %1752 = vrsqrt.f32 %v2859_v5  ;;  %v548_v45 = vmul.f32 0.05263158, %v482_v29 }
 0x122   : > { %v581_v1 = vmul.f32 %v2861_v52, %v2861_v52  ;;  %v932_v48 = vsub.f32 1.5, %v931_v41  ;;  %v1322_v22 = vmax.f32 %v1290_v61, 0.0  ;;  %v1262_v25 = vmul.f32 %v1230_v16, %v927_v54 }
 0x123   : > { %v1291_v30 = vadd.f32 %v2846_v20, %v1255_v31  ;;  %v612_v60 = vsub.f32 %v548_v45, %v580_v11  ;;  %v1343_v24 = vpack.c.bf16 %v1317_v50, %v1316_v17  ;;  %v950_v47 = vmul.f32 %v2718_v40, %v2761_v59 }
 0x124   : > { %v613_v13 = vsub.f32 %v549_v57, %v581_v1  ;;  %v1219_v0 = vsub.f32 %v2592_v56, %v2789_v35  ;;  %v1329_v53 = vmax.f32 %v2816_v27, 0.0  ;;  %v1218_v11 = vsub.f32 %v2539_v28, %v2813_v12 }
 0x125   : > { %v1323_v36 = vmax.f32 %v1291_v30, 0.0  ;;  %v644_v8 = vmax.f32 %v612_v60, 0.0  ;;  %1663 = vmatmul.msk.bf16.gmra.mxu1 %vm1386_vm9, %v1343_v24  ;;  %v933_v41 = vmul.f32 %v2594_v7, %v932_v48  ;;  %v2898_v59 = vmul.f32 %v2828_v19, %v959_v6  ;;  %v2923_v50 = vpop.f32.mrf.mxu3 }
 0x126   : > { %v2884_v34 = vpop.eup %1750  ;;  %v969_v51 = vmul.f32 %v2878_v4, %v2800_v9  ;;  %v1199_v12 = vmul.f32 %v2786_v21, %v2391_v23  ;;  %vm804_vm10 = vweird.f32 %v2837_v37  ;;  %vm814_vm11 = vweird.f32 %v2859_v5 }
 0x127   : > { %v799_v39 = vmul.f32 %v2884_v34, %v2837_v37  ;;  %v306_v44 = vpop.xlane.xlu0 %305  ;;  %v1346_v38 = vpack.c.bf16 %v1323_v36, %v1322_v22  ;;  %v1753_v61 = vpop.eup %1752  ;;  %vm805_vm12 = vweird.f32 %v2884_v34  ;;  %v2918_v15 = vadd.f32 1e-05, %v644_v8 }
 0x128   : > { %v500_v32 = vmul.f32 0.05263158, %v306_v44  ;;  %v434_v31 = vpop.xlane.xlu2 %433  ;;  %v809_v6 = vmul.f32 %v1753_v61, %v2859_v5  ;;  %v309_v57 = vpop.xlane.xlu1 %308  ;;  %v645_v17 = vmax.f32 %v613_v13, 0.0  ;;  %v937_v30 = vsel %vm2906_vm8, %v2594_v7, %v933_v41  ;;  %vm2936_vm14 = vmor %vm804_vm10, %vm805_vm12 }
 0x129   : > { %v800_v29 = vmul.f32 %v2884_v34, %v799_v39  ;;  %1666 = vmatmul.msk.bf16.vlgmr.msra.gmra.mxu2 %vm1386_vm9, %v1346_v38  ;;  %v532_v23 = vmul.f32 0.05263158, %v434_v31  ;;  %vm815_vm13 = vweird.f32 %v1753_v61  ;;  %v2926_v16 = vadd.f32 %v2846_v20, %v1262_v25 }
 0x12a   : > { %v564_v1 = vmul.f32 %v500_v32, %v500_v32  ;;  %v810_v54 = vmul.f32 %v1753_v61, %v809_v6  ;;  %v2928_v48 = vmul.f32 0.05263158, %v309_v57  ;;  %v1231_v22 = vsub.f32 %v2810_v26, %v1199_v12  ;;  %vm2950_vm0 = vmor %vm814_vm11, %vm815_vm13 }
 0x12b   : > { %v801_v45 = vmul.f32 0.5, %v800_v29  ;;  %v941_v24 = vmul.f32 0.5, %v2755_v49  ;;  %1754 = vrsqrt.f32 %v2918_v15  ;;  %v2941_v25 = vadd.f32 1e-05, %v645_v17 }
 0x12c   : > { %v811_v13 = vmul.f32 0.5, %v810_v54  ;;  %v596_v36 = vsub.f32 %v532_v23, %v564_v1  ;;  %v565_v26 = vmul.f32 %v2928_v48, %v2928_v48  ;;  %v1263_v8 = vmul.f32 %v1231_v22, %v937_v30 }
 0x12d   : > { %v802_v60 = vsub.f32 1.5, %v801_v45  ;;  %v942_v31 = vsub.f32 1.5, %v941_v24  ;;  %vm945_vm1 = vweird.f32 %v2670_v63  ;;  %v1200_v28 = vmul.f32 %v2786_v21, %v2523_v3  ;;  %v1160_v23 = vpop.f32.mrf.mxu3 }
 0x12e   : > { %v812_v44 = vsub.f32 1.5, %v811_v13  ;;  %v628_v49 = vmax.f32 %v596_v36, 0.0  ;;  %v951_v57 = vmul.f32 0.5, %v950_v47  ;;  %v970_v5 = vmul.f32 %v2878_v4, %v969_v51  ;;  %vm2981_vm3 = vmor %vm944_vm15, %vm945_vm1 }
 0x12f   : > { %v803_v39 = vmul.f32 %v2884_v34, %v802_v60  ;;  %v437_v38 = vpop.xlane.xlu0 %436  ;;  %vm1524_vm2 = vcmask 7168   ;;  %v2964_v45 = vmul.f32 %v2786_v21, %v500_v32  ;;  %v1330_v54 = vmax.f32 %v2926_v16, 0.0 }
 0x130   : > { %v533_v41 = vmul.f32 0.05263158, %v437_v38  ;;  %v813_v12 = vmul.f32 %v1753_v61, %v812_v44  ;;  %v2957_v29 = vadd.f32 1e-05, %v628_v49  ;;  %v1232_v32 = vsub.f32 %v2876_v10, %v1200_v28 }
 0x131   : > { %v807_v6 = vsel %vm2936_vm14, %v2884_v34, %v803_v39  ;;  %v2970_v30 = vpop.eup %1754  ;;  %v952_v22 = vsub.f32 1.5, %v951_v57  ;;  %v1299_v35 = vadd.f32 %v2846_v20, %v1263_v8  ;;  %vm955_vm5 = vweird.f32 %v2718_v40 }
 0x132   : > { %v597_v17 = vsub.f32 %v533_v41, %v565_v26  ;;  %v1250_v1 = vmul.f32 %v1218_v11, %v807_v6  ;;  %1756 = vrsqrt.f32 %v2957_v29  ;;  %v817_v3 = vsel %vm2950_vm0, %v1753_v61, %v813_v12  ;;  %vm2997_vm6 = vmor %vm954_vm4, %vm955_vm5 }
 0x133   : > { %1758 = vrsqrt.f32 %v2941_v25  ;;  %v1251_v47 = vmul.f32 %v1219_v0, %v817_v3  ;;  %v943_v61 = vmul.f32 %v2670_v63, %v942_v31  ;;  %v953_v60 = vmul.f32 %v2718_v40, %v952_v22 }
 0x134   : > { %v629_v34 = vmax.f32 %v597_v17, 0.0  ;;  %v1286_v11 = vadd.f32 %v2846_v20, %v1250_v1  ;;  %v961_v10 = vmul.f32 0.5, %v2898_v59  ;;  %v1233_v59 = vsub.f32 %v2923_v50, %v1201_v42  ;;  %v3243_v42 = vld [vmem:[#allocation3_spill] sm:$0xff] }
 0x135   : > { %v1287_v0 = vadd.f32 %v2846_v20, %v1251_v47  ;;  %v947_v62 = vsel %vm2981_vm3, %v2670_v63, %v943_v61  ;;  %v957_v55 = vsel %vm2997_vm6, %v2718_v40, %v953_v60  ;;  %v979_v39 = vmul.f32 %v2970_v30, %v2918_v15  ;;  %v1162_v6 = vpop.f32.mrf.mxu3 }
 0x136   : > { %v2988_v56 = vadd.f32 1e-05, %v629_v34  ;;  %v1318_v63 = vmax.f32 %v1286_v11, 0.0  ;;  %v1264_v24 = vmul.f32 %v1232_v32, %v947_v62  ;;  %v962_v26 = vsub.f32 1.5, %v961_v10 }
 0x137   : > { %v1319_v36 = vmax.f32 %v1287_v0, 0.0  ;;  %v1331_v49 = vmax.f32 %v1299_v35, 0.0  ;;  %vm965_vm8 = vweird.f32 %v2828_v19  ;;  %v1202_v50 = vmul.f32 %v2786_v21, %v2666_v18 }
 0x138   : > { %1760 = vrsqrt.f32 %v2988_v56  ;;  %v1757_v7 = vpop.eup %1756  ;;  %v1444_v38 = vpop.f32.mrf.mxu1  ;;  %v963_v40 = vmul.f32 %v2828_v19, %v962_v26  ;;  %vm824_vm10 = vweird.f32 %v2957_v29  ;;  %vm966_vm11 = vmor %vm964_vm7, %vm965_vm8  ;;  %v971_v31 = vmul.f32 0.5, %v970_v5 }
 0x139   : > { %1667 = vmatmul.msk.bf16.gmra.mxu2 %vm1386_vm9, %v2550_v2  ;;  %v3019_v8 = vpop.eup %1758  ;;  %v819_v44 = vmul.f32 %v1757_v7, %v2957_v29  ;;  %v1344_v37 = vpack.c.bf16 %v1319_v36, %v1318_v63  ;;  %1525 = vst.msk [vmem:[%s3010_s25] sm:$0xff] %vm1524_vm2, %v1444_v38  ;;  %v1265_v2 = vmul.f32 %v1233_v59, %v957_v55  ;;  %vm974_vm12 = vweird.f32 %v2800_v9 }
 0x13a   : > { %vm825_vm13 = vweird.f32 %v1757_v7  ;;  %v967_v28 = vsel %vm966_vm11, %v2828_v19, %v963_v40  ;;  %v1234_v12 = vsub.f32 %v1160_v23, %v1202_v50  ;;  %vm975_vm14 = vweird.f32 %v2878_v4 }
 0x13b   : > { %v820_v41 = vmul.f32 %v1757_v7, %v819_v44  ;;  %1664 = vmatmul.msk.bf16.gmra.mxu1 %vm1386_vm9, %v1344_v37  ;;  %v972_v17 = vsub.f32 1.5, %v971_v31  ;;  %v1203_v1 = vmul.f32 %v2786_v21, %v2690_v43  ;;  %v3238_v3 = vmax.f32 %v2752_v58, 0.0  ;;  %vm3049_vm15 = vmor %vm974_vm12, %vm975_vm14 }
 0x13c   : > { %v980_v9 = vmul.f32 %v2970_v30, %v979_v39  ;;  %v3047_v5 = vmul.f32 %v1234_v12, %v967_v28  ;;  %v3056_v58 = vpack.c.bf16 %v1331_v49, %v1330_v54  ;;  %v1220_v27 = vsub.f32 %v2646_v33, %v2964_v45  ;;  %vm3063_vm0 = vmor %vm824_vm10, %vm825_vm13 }
 0x13d   : > { %v821_v18 = vmul.f32 0.5, %v820_v41  ;;  %v3043_v14 = vpack.c.bf16 %v1329_v53, %v3238_v3  ;;  %v973_v43 = vmul.f32 %v2878_v4, %v972_v17  ;;  %v1235_v47 = vsub.f32 %v1162_v6, %v1203_v1 }
 0x13e   : > { %v1761_v57 = vpop.eup %1760  ;;  %v989_v51 = vmul.f32 %v3019_v8, %v2941_v25  ;;  %vm834_vm1 = vweird.f32 %v2988_v56  ;;  %v981_v45 = vmul.f32 0.5, %v980_v9  ;;  %v1189_v32 = vmul.f32 %v2786_v21, %v2928_v48 }
 0x13f   : > { %v829_v19 = vmul.f32 %v1761_v57, %v2988_v56  ;;  %v822_v34 = vsub.f32 1.5, %v821_v18  ;;  %v977_v54 = vsel %vm3049_vm15, %v2878_v4, %v973_v43  ;;  %vm835_vm3 = vweird.f32 %v1761_v57 }
 0x140   : > { %v1446_v16 = vpop.f32.mrf.mxu1  ;;  %v1267_v29 = vmul.f32 %v1235_v47, %v977_v54  ;;  %v1300_v22 = vadd.f32 %v2846_v20, %v1264_v24  ;;  %v1301_v35 = vadd.f32 %v2846_v20, %v1265_v2  ;;  %v982_v62 = vsub.f32 1.5, %v981_v45  ;;  %vm836_vm4 = vmor %vm834_vm1, %vm835_vm3  ;;  %v3244_v24 = vld [vmem:[#allocation2_spill] sm:$0xff]  ;;  %v1165_v49 = vpop.f32.mrf.mxu3 }
 0x141   : > { %v830_v11 = vmul.f32 %v1761_v57, %v829_v19  ;;  %v823_v61 = vmul.f32 %v1757_v7, %v822_v34  ;;  %1526 = vst.msk [vmem:[%s3010_s25 + $0x8] sm:$0xff] %vm1524_vm2, %v1446_v16  ;;  %vm984_vm5 = vweird.f32 %v2918_v15  ;;  %vm985_vm6 = vweird.f32 %v2970_v30 }
 0x142   : > { %v990_v60 = vmul.f32 %v3019_v8, %v989_v51  ;;  %v1221_v48 = vsub.f32 %v3243_v42, %v1189_v32  ;;  %v1332_v10 = vmax.f32 %v1300_v22, 0.0  ;;  %v1333_v63 = vmax.f32 %v1301_v35, 0.0  ;;  %vm986_vm7 = vmor %vm984_vm5, %vm985_vm6 }
 0x143   : > { %v831_v33 = vmul.f32 0.5, %v830_v11  ;;  %v827_v56 = vsel %vm3063_vm0, %v1757_v7, %v823_v61  ;;  %v983_v36 = vmul.f32 %v2970_v30, %v982_v62  ;;  %v1204_v55 = vmul.f32 %v2786_v21, %v2807_v46 }
 0x144   : > { %v1252_v4 = vmul.f32 %v1220_v27, %v827_v56  ;;  %v991_v26 = vmul.f32 0.5, %v990_v60  ;;  %v1351_v38 = vpack.c.bf16 %v1333_v63, %v1332_v10  ;;  %vm994_vm8 = vweird.f32 %v2941_v25 }
 0x145   : > { %v832_v0 = vsub.f32 1.5, %v831_v33  ;;  %v987_v44 = vsel %vm986_vm7, %v2970_v30, %v983_v36  ;;  %v1236_v37 = vsub.f32 %v1165_v49, %v1204_v55  ;;  %vm995_vm10 = vweird.f32 %v3019_v8 }
 0x146   : > { %v1288_v59 = vadd.f32 %v2846_v20, %v1252_v4  ;;  %v992_v2 = vsub.f32 1.5, %v991_v26  ;;  %vm996_vm11 = vmor %vm994_vm8, %vm995_vm10  ;;  %v1205_v30 = vmul.f32 %v2786_v21, %v2861_v52  ;;  %v1303_v18 = vadd.f32 %v2846_v20, %v1267_v29 }
 0x147   : > { %v833_v13 = vmul.f32 %v1761_v57, %v832_v0  ;;  %v1268_v46 = vmul.f32 %v1236_v37, %v987_v44 }
 0x148   : > { %v1320_v40 = vmax.f32 %v1288_v59, 0.0  ;;  %v993_v28 = vmul.f32 %v3019_v8, %v992_v2  ;;  %v1167_v25 = vpop.f32.mrf.mxu3  ;;  %v1335_v52 = vmax.f32 %v1303_v18, 0.0 }
 0x149   : > { %1668 = vmatmul.msk.bf16.gmra.mxu2 %vm1386_vm9, %v3244_v24  ;;  %v837_v7 = vsel %vm836_vm4, %v1761_v57, %v833_v13  ;;  %v1237_v6 = vsub.f32 %v1167_v25, %v1205_v30  ;;  %v1302_v57 = vadd.f32 %v2846_v20, %v3047_v5  ;;  %v1304_v19 = vadd.f32 %v2846_v20, %v1268_v46 }
 0x14a   : > { %v1253_v15 = vmul.f32 %v1221_v48, %v837_v7  ;;  %v997_v12 = vsel %vm996_vm11, %v3019_v8, %v993_v28 }
 0x14b   : > { %v1269_v17 = vmul.f32 %v1237_v6, %v997_v12  ;;  %v1334_v21 = vmax.f32 %v1302_v57, 0.0  ;;  %v1336_v5 = vmax.f32 %v1304_v19, 0.0 }
 0x14c   : > { %v1289_v39 = vadd.f32 %v2846_v20, %v1253_v15 }
 0x14d   : > { %v1352_v8 = vpack.c.bf16 %v1335_v52, %v1334_v21 }
 0x14e   : > { %v1321_v50 = vmax.f32 %v1289_v39, 0.0  ;;  %v1449_v41 = vpop.f32.mrf.mxu1 }
 0x14f   : > { %1527 = vst.msk [vmem:[%s3010_s25 + $0x10] sm:$0xff] %vm1524_vm2, %v1449_v41 }
 0x150   : > { %v1345_v31 = vpack.c.bf16 %v1321_v50, %v1320_v40 }
 0x152   : > { %1665 = vmatmul.msk.bf16.gmra.mxu1 %vm1386_vm9, %v1345_v31 }
 0x156   : > { %v1451_v1 = vpop.f32.mrf.mxu1 }
 0x157   : > { %1528 = vst.msk [vmem:[%s3010_s25 + $0x18] sm:$0xff] %vm1524_vm2, %v1451_v1 }
 0x159   : > { %1669 = vmatmul.msk.bf16.gmra.mxu2 %vm1386_vm9, %v3043_v14  ;;  %v1305_v14 = vadd.f32 %v2846_v20, %v1269_v17 }
 0x15b   : > { %v1337_v23 = vmax.f32 %v1305_v14, 0.0 }
 0x15d   : > { %v1353_v34 = vpack.c.bf16 %v1337_v23, %v1336_v5 }
 0x161   : > { %v1454_v3 = vpop.f32.mrf.mxu1 }
 0x162   : > { %1529 = vst.msk [vmem:[%s3010_s25 + $0x20] sm:$0xff] %vm1524_vm2, %v1454_v3 }
 0x169   : > { %1670 = vmatmul.msk.bf16.gmra.mxu2 %vm1386_vm9, %v3056_v58  ;;  %v1456_v9 = vpop.f32.mrf.mxu1 }
 0x16a   : > { %1530 = vst.msk [vmem:[%s3010_s25 + $0x28] sm:$0xff] %vm1524_vm2, %v1456_v9 }
 0x178   : > { %v1459_v43 = vpop.f32.mrf.mxu1 }
 0x179   : > { %1671 = vmatmul.msk.bf16.gmra.mxu2 %vm1386_vm9, %v1351_v38  ;;  %1531 = vst.msk [vmem:[%s3010_s25 + $0x30] sm:$0xff] %vm1524_vm2, %v1459_v43 }
 0x180   : > { %v1461_v47 = vpop.f32.mrf.mxu1 }
 0x181   : > { %1532 = vst.msk [vmem:[%s3010_s25 + $0x38] sm:$0xff] %vm1524_vm2, %v1461_v47 }
 0x189   : > { %1672 = vmatmul.msk.bf16.gmra.mxu2 %vm1386_vm9, %v1352_v8 }
 0x190   : > { %v1464_v58 = vpop.f32.mrf.mxu1 }
 0x191   : > { %1533 = vst.msk [vmem:[%s3010_s25 + $0x40] sm:$0xff] %vm1524_vm2, %v1464_v58 }
 0x198   : > { %v1466_v20 = vpop.f32.mrf.mxu1 }
 0x199   : > { %1673 = vmatmul.msk.bf16.gmra.mxu2 %vm1386_vm9, %v1353_v34  ;;  %1534 = vst.msk [vmem:[%s3010_s25 + $0x48] sm:$0xff] %vm1524_vm2, %v1466_v20 }
 0x1a2   : > { %v1469_v27 = vpop.f32.mrf.mxu1 }
 0x1a3   : > { %1535 = vst.msk [vmem:[%s3010_s25 + $0x50] sm:$0xff] %vm1524_vm2, %v1469_v27 }
 0x1aa   : > { %v1471_v53 = vpop.f32.mrf.mxu1 }
 0x1ab   : > { %1536 = vst.msk [vmem:[%s3010_s25 + $0x58] sm:$0xff] %vm1524_vm2, %v1471_v53 }
 0x1ac   : > { %v1484_v11 = vpop.f32.mrf.mxu2 }
 0x1ad   : > { %1541 = vst.msk [vmem:[%s3010_s25 + $0x80] sm:$0xff] %vm1524_vm2, %v1484_v11 }
 0x1b4   : > { %v1486_v51 = vpop.f32.mrf.mxu2 }
 0x1b5   : > { %1542 = vst.msk [vmem:[%s3010_s25 + $0x88] sm:$0xff] %vm1524_vm2, %v1486_v51 }
 0x1b8   : > { %v1474_v61 = vpop.f32.mrf.mxu1 }
 0x1b9   : > { %1537 = vst.msk [vmem:[%s3010_s25 + $0x60] sm:$0xff] %vm1524_vm2, %v1474_v61 }
 0x1bc   : > { %v1489_v16 = vpop.f32.mrf.mxu2 }
 0x1bd   : > { %1543 = vst.msk [vmem:[%s3010_s25 + $0x90] sm:$0xff] %vm1524_vm2, %v1489_v16 }
 0x1c0   : > { %v1476_v54 = vpop.f32.mrf.mxu1 }
 0x1c1   : > { %1538 = vst.msk [vmem:[%s3010_s25 + $0x68] sm:$0xff] %vm1524_vm2, %v1476_v54 }
 0x1c4   : > { %v1491_v33 = vpop.f32.mrf.mxu2 }
 0x1c5   : > { %1544 = vst.msk [vmem:[%s3010_s25 + $0x98] sm:$0xff] %vm1524_vm2, %v1491_v33 }
 0x1cc   : > { %v1494_v29 = vpop.f32.mrf.mxu2 }
 0x1cd   : > { %1545 = vst.msk [vmem:[%s3010_s25 + $0xa0] sm:$0xff] %vm1524_vm2, %v1494_v29 }
 0x1cf   : > { %v1479_v45 = vpop.f32.mrf.mxu1 }
 0x1d0   : > { %1539 = vst.msk [vmem:[%s3010_s25 + $0x70] sm:$0xff] %vm1524_vm2, %v1479_v45 }
 0x1d4   : > { %v1496_v32 = vpop.f32.mrf.mxu2 }
 0x1d5   : > { %1546 = vst.msk [vmem:[%s3010_s25 + $0xa8] sm:$0xff] %vm1524_vm2, %v1496_v32 }
 0x1d7   : > { %v1481_v22 = vpop.f32.mrf.mxu1 }
 0x1d8   : > { %1540 = vst.msk [vmem:[%s3010_s25 + $0x78] sm:$0xff] %vm1524_vm2, %v1481_v22 }
 0x1dc   : > { %v1499_v35 = vpop.f32.mrf.mxu2 }
 0x1dd   : > { %1547 = vst.msk [vmem:[%s3010_s25 + $0xb0] sm:$0xff] %vm1524_vm2, %v1499_v35 }
 0x1e4   : > { %v1501_v56 = vpop.f32.mrf.mxu2 }
 0x1e5   : > { %1548 = vst.msk [vmem:[%s3010_s25 + $0xb8] sm:$0xff] %vm1524_vm2, %v1501_v56 }
 0x1ec   : > { %v1504_v0 = vpop.f32.mrf.mxu2 }
 0x1ed   : > { %1549 = vst.msk [vmem:[%s3010_s25 + $0xc0] sm:$0xff] %vm1524_vm2, %v1504_v0 }
 0x1f4   : > { %v1506_v62 = vpop.f32.mrf.mxu2 }
 0x1f5   : > { %1550 = vst.msk [vmem:[%s3010_s25 + $0xc8] sm:$0xff] %vm1524_vm2, %v1506_v62 }
 0x1fc   : > { %v1509_v4 = vpop.f32.mrf.mxu2 }
 0x1fd   : > { %1551 = vst.msk [vmem:[%s3010_s25 + $0xd0] sm:$0xff] %vm1524_vm2, %v1509_v4 }
 0x204   : > { %v1511_v60 = vpop.f32.mrf.mxu2 }
 0x205   : > { %1552 = vst.msk [vmem:[%s3010_s25 + $0xd8] sm:$0xff] %vm1524_vm2, %v1511_v60 }
 0x20c   : > { %v1514_v13 = vpop.f32.mrf.mxu2 }
 0x20d   : > { %1553 = vst.msk [vmem:[%s3010_s25 + $0xe0] sm:$0xff] %vm1524_vm2, %v1514_v13 }
 0x214   : > { %v1516_v42 = vpop.f32.mrf.mxu2 }
 0x215   : > { %1554 = vst.msk [vmem:[%s3010_s25 + $0xe8] sm:$0xff] %vm1524_vm2, %v1516_v42 }
 0x21c   : > { %v1519_v48 = vpop.f32.mrf.mxu2 }
 0x21d   : > { %1555 = vst.msk [vmem:[%s3010_s25 + $0xf0] sm:$0xff] %vm1524_vm2, %v1519_v48 }
 0x224   : > { %v1521_v10 = vpop.f32.mrf.mxu2 }
 0x225   : > { %1556 = vst.msk [vmem:[%s3010_s25 + $0xf8] sm:$0xff] %vm1524_vm2, %v1521_v10 }
 0x226 PF: > { %s15_s18 = sadd.s32 1, %s1770_s18  }
 0x227   : > { %p12_p4 = scmp.ge.s32.totalorder %s15_s18, 4  }
 0x229   :  { %14 = sbr.rel (!%p12_p4) target bundleno = 1 (0x1), region = 70 }

</bundles_post_ra>
